<compile_context>
chip_gen: v7x
topology: tpu7x:2x2x1
jax: 0.10.0
libtpu: 0.0.40
codegen_flags: <defaults>
</compile_context>

<pallas_src>
import functools

import jax
import jax.numpy as jnp
from jax import lax
from jax.experimental import pallas as pl
from jax.experimental.pallas import tpu as pltpu


def _round_up(v, m):
    return ((v + m - 1) // m) * m


def _vmem_tile_bytes(shape, dtype):
    """VMEM footprint of one buffer of `shape` after (8,128) lane padding."""
    s = list(shape)
    s[-1] = _round_up(s[-1], 128)
    if len(s) >= 2:
        s[-2] = _round_up(s[-2], 8)
    n = 1
    for d in s:
        n *= d
    return n * jnp.dtype(dtype).itemsize


def fcg_gnn_kernel(x_ref, mask_ref, wnode_ref, wembed_ref, wout_ref, bout_ref,
                   out_ref, *, depth_embed, iter_level, bf16_mask_matmul):
    # x_ref:     (b_blk, N_pad, Nx_pad)       f32
    # mask_ref:  (b_blk, N_pad, N_pad)        bf16 (0/1, exact)
    # wnode_ref: (Nx_pad, E_pad)              compute dtype (f32 or bf16)
    # wembed_ref:(depth_embed, E_pad, E_pad)  compute dtype
    # wout_ref:  (E_pad, Nout_pad)            compute dtype
    # bout_ref:  (1, Nout_pad)                f32
    # out_ref:   (b_blk, Nout_pad)            f32
    b_blk, n_nodes, _ = x_ref.shape
    e = wnode_ref.shape[1]
    f32 = jnp.float32
    w_dtype = wnode_ref.dtype          # weights already in compute dtype

    # Node projection: fold (batch, node) into one M dimension for the MXU.
    x = x_ref[...]
    node_val = jnp.dot(x.reshape(b_blk * n_nodes, -1).astype(w_dtype),
                       wnode_ref[...], preferred_element_type=f32)
    node_val = node_val.reshape(b_blk, n_nodes, e)
    cur_msg = jnp.maximum(node_val, 0.0)                      # relu, f32

    mm_dtype = mask_ref.dtype if bf16_mask_matmul else f32

    def one_iteration(cur_msg):
        # Dominant FLOP term: Li_t = msg_mask @ cur_msg (batched over b_blk).
        # Mask is exact 0/1 in bf16; bf16 operands + f32 accumulation run the
        # MXU at 2-4x the f32 rate on every generation.  The mask is re-read
        # from its VMEM block each iteration (cheap) instead of being held
        # live in vregs across the whole loop.
        mask = mask_ref[...].astype(mm_dtype)
        li_t = jnp.einsum('bnm,bme->bne', mask, cur_msg.astype(mm_dtype),
                          preferred_element_type=f32)
        cur_info = li_t.reshape(b_blk * n_nodes, e)
        # Embedding stack: relu on every layer except the last.  (The torch
        # code skips by value via torch.equal(Wi, Wembed[-1]); skipping by
        # index matches except in the degenerate case where an earlier layer
        # is bitwise-equal to the last one.)
        for d in range(depth_embed):
            cur_info = jnp.dot(cur_info.astype(w_dtype), wembed_ref[d],
                               preferred_element_type=f32)
            if d != depth_embed - 1:
                cur_info = jnp.maximum(cur_info, 0.0)
        # add / tanh stay f32 (v5e VPU/EUP have no bf16 path; EUP has slack).
        return jnp.tanh(node_val + cur_info.reshape(b_blk, n_nodes, e))

    # fori_loop bounds live ranges (a static Python for would not); unroll for
    # short trip counts keeps full LLO scheduler visibility.
    cur_msg = lax.fori_loop(0, iter_level, lambda _, m: one_iteration(m),
                            cur_msg, unroll=True if iter_level <= 4 else 1)

    # g_embed = sum over node axis, then lane-dense (128-wide) output block.
    g_embed = jnp.sum(cur_msg, axis=1)                        # (b_blk, E_pad)
    out = jnp.dot(g_embed.astype(w_dtype), wout_ref[...],
                  preferred_element_type=f32) + bout_ref[...]
    out_ref[...] = out.astype(out_ref.dtype)


def fcg_gnn_forward(x, msg_mask, wnode, wembed, w_output, b_output, *,
                    iter_level, bf16_mask_matmul=True, bf16_weights=False,
                    b_blk=None, single_buffer_weights=True):
    B, N, N_x = x.shape
    depth_embed, E, _ = wembed.shape
    N_out = w_output.shape[1]

    f32 = jnp.float32
    w_dtype = jnp.bfloat16 if bf16_weights else f32

    # TPU-friendly padded shapes.  Zero padding is exact (padded rows/cols
    # stay zero through matmul/relu/tanh since tanh(0)=0) and is sliced off.
    N_pad = _round_up(N, 8)
    Nx_pad = _round_up(N_x, 8)
    E_pad = _round_up(E, 128)          # lane-dense activations / weights
    Nout_pad = _round_up(N_out, 128)   # lane-dense (unmasked vst) output

    # Batch-block size: the node / embedding matmuls see M = b_blk * N_pad, so
    # aim for M >= 256 (fills the 256-wide v6e/v7x MXU; v5e's 128 is covered
    # too), but keep >= 2 grid steps when B allows it so both v7x TensorCores
    # get a "parallel" step.  b_blk must be a multiple of 8 (or equal B_pad)
    # to keep the output block sublane-legal.
    if b_blk is None:
        if B <= 8:
            b_blk = B                      # single grid step; block == array
        else:
            want_mxu = _round_up(max(1, (256 + N_pad - 1) // N_pad), 8)
            half_batch = _round_up((B + 1) // 2, 8)
            b_blk = max(8, min(want_mxu, half_batch))
    B_pad = _round_up(B, b_blk)

    x_p = jnp.zeros((B_pad, N_pad, Nx_pad), f32).at[:B, :N, :N_x].set(
        x.astype(f32))
    # 0/1 mask is exact in bf16 -> halves its HBM / DMA / VMEM bytes.
    mask_p = jnp.zeros((B_pad, N_pad, N_pad), jnp.bfloat16).at[:B, :N, :N].set(
        msg_mask.astype(jnp.bfloat16))
    # Weights shipped already in their compute dtype (no in-kernel casts).
    wnode_p = jnp.zeros((Nx_pad, E_pad), w_dtype).at[:N_x, :E].set(
        wnode.astype(w_dtype))
    wembed_p = jnp.zeros((depth_embed, E_pad, E_pad), w_dtype).at[
        :, :E, :E].set(wembed.astype(w_dtype))
    wout_p = jnp.zeros((E_pad, Nout_pad), w_dtype).at[:E, :N_out].set(
        w_output.astype(w_dtype))
    bout_p = jnp.zeros((1, Nout_pad), f32).at[0, :N_out].set(
        b_output.astype(f32))

    # Advisory cost estimate so XLA schedules the surrounding padding ops.
    m_rows = B_pad * N_pad
    flops = int(2 * m_rows * Nx_pad * E_pad
                + iter_level * (2 * B_pad * N_pad * N_pad * E_pad
                                + 2 * depth_embed * m_rows * E_pad * E_pad)
                + 2 * B_pad * E_pad * Nout_pad)
    transcendentals = int(iter_level * m_rows * E_pad)
    bytes_accessed = int(sum(int(a.size) * a.dtype.itemsize
                             for a in (x_p, mask_p, wnode_p, wembed_p,
                                       wout_p, bout_p))
                         + B_pad * Nout_pad * 4)
    cost = pl.CostEstimate(flops=flops, transcendentals=transcendentals,
                           bytes_accessed=bytes_accessed)

    # Explicit scoped-VMEM budget sized from the actual blocks.
    weight_bufs = 1 if single_buffer_weights else 2
    block_bytes = (
        2 * _vmem_tile_bytes((b_blk, N_pad, Nx_pad), f32)              # x
        + 2 * _vmem_tile_bytes((b_blk, N_pad, N_pad), jnp.bfloat16)    # mask
        + 2 * _vmem_tile_bytes((b_blk, Nout_pad), f32)                 # out
        + weight_bufs * (_vmem_tile_bytes((Nx_pad, E_pad), w_dtype)
                         + _vmem_tile_bytes((depth_embed, E_pad, E_pad),
                                            w_dtype)
                         + _vmem_tile_bytes((E_pad, Nout_pad), w_dtype)
                         + _vmem_tile_bytes((1, Nout_pad), f32))
        # live f32 intermediates (node_val, cur_msg, li_t/cur_info, slack)
        + 4 * _vmem_tile_bytes((b_blk, N_pad, E_pad), f32)
        + _vmem_tile_bytes((b_blk, N_pad, N_pad), f32))
    try:   # 128 MiB on v5e/v6e, 64 MiB on v7x
        vmem_cap = int(pltpu.get_tpu_info().vmem_capacity_bytes)
    except Exception:
        vmem_cap = 64 * 1024 * 1024        # conservative (v7x) fallback
    vmem_limit = int(min(max(2 * block_bytes, 32 * 1024 * 1024),
                         (3 * vmem_cap) // 4))   # ~96 MiB v5e/v6e, ~48 MiB v7x

    kernel = functools.partial(fcg_gnn_kernel, depth_embed=depth_embed,
                               iter_level=iter_level,
                               bf16_mask_matmul=bf16_mask_matmul)

    def _const_index_map(rank):
        zeros = (0,) * rank
        return lambda b: zeros

    def _call(use_single_buffer):
        def const_spec(shape):
            if use_single_buffer:
                # Grid-invariant operands: fetched once, one VMEM buffer.
                return pl.BlockSpec(shape, _const_index_map(len(shape)),
                                    pipeline_mode=pl.Buffered(1))
            return pl.BlockSpec(shape, _const_index_map(len(shape)))

        # TODO(synk): for very large N, add a node-row grid axis ("arbitrary")
        # streaming mask row-blocks so the per-step footprint fits v7x's
        # 64 MiB VMEM; X could also be flattened host-side to a lane-dense 2D
        # block once the in-kernel minor-dim reshape relayout is verified on
        # the target runtime (X's block already covers its full trailing dims,
        # so its HBM-side DMA is a single contiguous chunk today).
        return pl.pallas_call(
            kernel,
            out_shape=jax.ShapeDtypeStruct((B_pad, Nout_pad), f32),
            grid_spec=pltpu.PrefetchScalarGridSpec(
                num_scalar_prefetch=0,
                grid=(B_pad // b_blk,),
                in_specs=[
                    pl.BlockSpec((b_blk, N_pad, Nx_pad), lambda b: (b, 0, 0)),
                    pl.BlockSpec((b_blk, N_pad, N_pad), lambda b: (b, 0, 0)),
                    const_spec((Nx_pad, E_pad)),
                    const_spec((depth_embed, E_pad, E_pad)),
                    const_spec((E_pad, Nout_pad)),
                    const_spec((1, Nout_pad)),
                ],
                out_specs=pl.BlockSpec((b_blk, Nout_pad), lambda b: (b, 0)),
            ),
            compiler_params=pltpu.CompilerParams(
                dimension_semantics=("parallel",),
                vmem_limit_bytes=vmem_limit),
            cost_estimate=cost,
        )(x_p, mask_p, wnode_p, wembed_p, wout_p, bout_p)

    if single_buffer_weights:
        try:
            out = _call(True)
        except Exception:
            # Fallback if this runtime rejects pl.Buffered(1): default
            # double-buffering (one extra VMEM copy of the weights).
            out = _call(False)
    else:
        out = _call(False)
    return out[:B, :N_out]


def fcg_gnn_reference(x, msg_mask, wnode, wembed, w_output, b_output, *,
                      iter_level, bf16_mask_matmul=False):
    """Plain-JAX mirror of the PyTorch forward.

    bf16_mask_matmul=True mirrors the kernel's default precision policy for
    the mask matmul (bf16 operands, f32 accumulation)."""
    depth_embed = wembed.shape[0]
    f32 = jnp.float32
    mm_dtype = jnp.bfloat16 if bf16_mask_matmul else f32
    node_val = jnp.einsum('bnx,xe->bne', x, wnode)
    cur_msg = jax.nn.relu(node_val)
    mask = msg_mask.astype(mm_dtype)
    for _ in range(iter_level):
        li_t = jnp.einsum('bnm,bme->bne', mask, cur_msg.astype(mm_dtype),
                          preferred_element_type=f32)
        cur_info = li_t
        for d in range(depth_embed):
            cur_info = jnp.einsum('bne,ef->bnf', cur_info, wembed[d])
            if d != depth_embed - 1:
                cur_info = jax.nn.relu(cur_info)
        cur_msg = jnp.tanh(node_val + cur_info)
    g_embed = jnp.sum(cur_msg, axis=-2)
    return g_embed @ w_output + b_output


if __name__ == "__main__":
    # Small shapes consistent with the module's forward.
    B, N_nodes = 2, 16
    N_x, N_embed, N_out = 8, 32, 8
    depth_embed, iter_level = 2, 3

    key = jax.random.PRNGKey(0)
    kx, km, k1, k2, k3, k4 = jax.random.split(key, 6)

    x = jax.random.normal(kx, (B, N_nodes, N_x), dtype=jnp.float32)
    msg_mask = (jax.random.uniform(km, (B, N_nodes, N_nodes)) < 0.3
                ).astype(jnp.float32)

    wnode = jax.random.normal(k1, (N_x, N_embed), dtype=jnp.float32)
    wembed = jax.random.normal(k2, (depth_embed, N_embed, N_embed),
                               dtype=jnp.float32)
    w_output = jax.random.normal(k3, (N_embed, N_out), dtype=jnp.float32)
    b_output = jax.random.normal(k4, (N_out,), dtype=jnp.float32)

    # 1) Exact-semantics path (f32 mask matmul) vs the f32 reference.
    out_f32 = fcg_gnn_forward(x, msg_mask, wnode, wembed, w_output, b_output,
                              iter_level=iter_level, bf16_mask_matmul=False)
    out_f32 = jax.block_until_ready(out_f32)
    ref_f32 = fcg_gnn_reference(x, msg_mask, wnode, wembed, w_output, b_output,
                                iter_level=iter_level, bf16_mask_matmul=False)
    assert out_f32.shape == (B, N_out)
    assert jnp.allclose(out_f32, ref_f32, rtol=2e-2, atol=2e-2), (out_f32,
                                                                  ref_f32)

    # 2) Default fast path (bf16 mask matmul on the MXU) vs a matching-
    #    precision JAX reference.  Looser tolerance: the iterated tanh
    #    recurrence amplifies ulp-level accumulation-order differences.
    out_fast = fcg_gnn_forward(x, msg_mask, wnode, wembed, w_output, b_output,
                               iter_level=iter_level)   # bf16_mask_matmul=True
    out_fast = jax.block_until_ready(out_fast)
    ref_fast = fcg_gnn_reference(x, msg_mask, wnode, wembed, w_output,
                                 b_output, iter_level=iter_level,
                                 bf16_mask_matmul=True)
    assert jnp.allclose(out_fast, ref_fast, rtol=5e-2, atol=5e-2), (out_fast,
                                                                    ref_fast)

    print("KERNEL_OK")
</pallas_src>

<mosaic_0001>
module attributes {stable_mosaic.version = 11 : i64} {
  func.func @fcg_gnn_kernel(%arg0: i32, %arg1: memref<2x16x8xf32, #tpu.memory_space<vmem>>, %arg2: memref<2x16x16xbf16, #tpu.memory_space<vmem>>, %arg3: memref<8x128xf32, #tpu.memory_space<vmem>>, %arg4: memref<2x128x128xf32, #tpu.memory_space<vmem>>, %arg5: memref<128x128xf32, #tpu.memory_space<vmem>>, %arg6: memref<1x128xf32, #tpu.memory_space<vmem>>, %arg7: memref<2x128xf32, #tpu.memory_space<vmem>>) attributes {dimension_semantics = [#tpu.dimension_semantics<parallel>], iteration_bounds = array<i64: 1>, scalar_prefetch = 0 : i64, scratch_operands = 0 : i64, tpu.core_type = #tpu.core_type<tc>, window_params = [{transform_indices = @transform_0, window_bounds = array<i64: 2, 16, 8>}, {transform_indices = @transform_1, window_bounds = array<i64: 2, 16, 16>}, {pipeline_mode = #tpu.pipeline_mode<synchronous>, transform_indices = @transform_2, window_bounds = array<i64: 8, 128>}, {pipeline_mode = #tpu.pipeline_mode<synchronous>, transform_indices = @transform_3, window_bounds = array<i64: 2, 128, 128>}, {pipeline_mode = #tpu.pipeline_mode<synchronous>, transform_indices = @transform_4, window_bounds = array<i64: 128, 128>}, {pipeline_mode = #tpu.pipeline_mode<synchronous>, transform_indices = @transform_5, window_bounds = array<i64: 1, 128>}, {transform_indices = @transform_6, window_bounds = array<i64: 2, 128>}]} {
    %c0 = arith.constant 0 : index
    %c0_0 = arith.constant 0 : index
    %c0_1 = arith.constant 0 : index
    %0 = vector.load %arg1[%c0, %c0_0, %c0_1] : memref<2x16x8xf32, #tpu.memory_space<vmem>>, vector<2x16x8xf32>
    %1 = vector.shape_cast %0 : vector<2x16x8xf32> to vector<32x8xf32>
    %c0_2 = arith.constant 0 : index
    %c0_3 = arith.constant 0 : index
    %2 = vector.load %arg3[%c0_2, %c0_3] : memref<8x128xf32, #tpu.memory_space<vmem>>, vector<8x128xf32>
    %cst = arith.constant dense<0.000000e+00> : vector<32x128xf32>
    %3 = tpu.matmul %1, %2, %cst {dimension_numbers = #tpu.dot_dimension_numbers<[1], [0], [0], [1], [0, 0, 1, 1], [], []>} : vector<32x8xf32>, vector<8x128xf32>, vector<32x128xf32> -> vector<32x128xf32>
    %4 = vector.shape_cast %3 : vector<32x128xf32> to vector<2x16x128xf32>
    %cst_4 = arith.constant 0.000000e+00 : f32
    %5 = vector.broadcast %cst_4 : f32 to vector<2x16x128xf32>
    %6 = arith.maximumf %4, %5 : vector<2x16x128xf32>
    %c0_i32 = arith.constant 0 : i32
    %c0_5 = arith.constant 0 : index
    %c0_6 = arith.constant 0 : index
    %c0_7 = arith.constant 0 : index
    %7 = vector.load %arg2[%c0_5, %c0_6, %c0_7] : memref<2x16x16xbf16, #tpu.memory_space<vmem>>, vector<2x16x16xbf16>
    %8 = arith.extf %7 : vector<2x16x16xbf16> to vector<2x16x16xf32>
    "tpu.trace_start"() <{level = 10 : i32, message = "bnm,bme->bne"}> : () -> ()
    %cst_8 = arith.constant dense<0.000000e+00> : vector<2x16x128xf32>
    %9 = tpu.matmul %8, %6, %cst_8 {dimension_numbers = #tpu.dot_dimension_numbers<[2], [1], [1], [2], [0, 0, 0, 1, 1, 2], [0], [0]>} : vector<2x16x16xf32>, vector<2x16x128xf32>, vector<2x16x128xf32> -> vector<2x16x128xf32>
    "tpu.trace_stop"() : () -> ()
    %10 = vector.shape_cast %9 : vector<2x16x128xf32> to vector<32x128xf32>
    %c0_9 = arith.constant 0 : index
    %c0_10 = arith.constant 0 : index
    %c0_11 = arith.constant 0 : index
    %11 = vector.load %arg4[%c0_9, %c0_10, %c0_11] : memref<2x128x128xf32, #tpu.memory_space<vmem>>, vector<1x128x128xf32>
    %12 = vector.shape_cast %11 : vector<1x128x128xf32> to vector<128x128xf32>
    %cst_12 = arith.constant dense<0.000000e+00> : vector<32x128xf32>
    %13 = tpu.matmul %10, %12, %cst_12 {dimension_numbers = #tpu.dot_dimension_numbers<[1], [0], [0], [1], [0, 0, 1, 1], [], []>} : vector<32x128xf32>, vector<128x128xf32>, vector<32x128xf32> -> vector<32x128xf32>
    %cst_13 = arith.constant 0.000000e+00 : f32
    %14 = vector.broadcast %cst_13 : f32 to vector<32x128xf32>
    %15 = arith.maximumf %13, %14 : vector<32x128xf32>
    %c1 = arith.constant 1 : index
    %c0_14 = arith.constant 0 : index
    %c0_15 = arith.constant 0 : index
    %16 = vector.load %arg4[%c1, %c0_14, %c0_15] : memref<2x128x128xf32, #tpu.memory_space<vmem>>, vector<1x128x128xf32>
    %17 = vector.shape_cast %16 : vector<1x128x128xf32> to vector<128x128xf32>
    %cst_16 = arith.constant dense<0.000000e+00> : vector<32x128xf32>
    %18 = tpu.matmul %15, %17, %cst_16 {dimension_numbers = #tpu.dot_dimension_numbers<[1], [0], [0], [1], [0, 0, 1, 1], [], []>} : vector<32x128xf32>, vector<128x128xf32>, vector<32x128xf32> -> vector<32x128xf32>
    %19 = vector.shape_cast %18 : vector<32x128xf32> to vector<2x16x128xf32>
    %20 = arith.addf %4, %19 : vector<2x16x128xf32>
    %21 = math.tanh %20 : vector<2x16x128xf32>
    %c1_i32 = arith.constant 1 : i32
    %c0_17 = arith.constant 0 : index
    %c0_18 = arith.constant 0 : index
    %c0_19 = arith.constant 0 : index
    %22 = vector.load %arg2[%c0_17, %c0_18, %c0_19] : memref<2x16x16xbf16, #tpu.memory_space<vmem>>, vector<2x16x16xbf16>
    %23 = arith.extf %22 : vector<2x16x16xbf16> to vector<2x16x16xf32>
    "tpu.trace_start"() <{level = 10 : i32, message = "bnm,bme->bne"}> : () -> ()
    %cst_20 = arith.constant dense<0.000000e+00> : vector<2x16x128xf32>
    %24 = tpu.matmul %23, %21, %cst_20 {dimension_numbers = #tpu.dot_dimension_numbers<[2], [1], [1], [2], [0, 0, 0, 1, 1, 2], [0], [0]>} : vector<2x16x16xf32>, vector<2x16x128xf32>, vector<2x16x128xf32> -> vector<2x16x128xf32>
    "tpu.trace_stop"() : () -> ()
    %25 = vector.shape_cast %24 : vector<2x16x128xf32> to vector<32x128xf32>
    %c0_21 = arith.constant 0 : index
    %c0_22 = arith.constant 0 : index
    %c0_23 = arith.constant 0 : index
    %26 = vector.load %arg4[%c0_21, %c0_22, %c0_23] : memref<2x128x128xf32, #tpu.memory_space<vmem>>, vector<1x128x128xf32>
    %27 = vector.shape_cast %26 : vector<1x128x128xf32> to vector<128x128xf32>
    %cst_24 = arith.constant dense<0.000000e+00> : vector<32x128xf32>
    %28 = tpu.matmul %25, %27, %cst_24 {dimension_numbers = #tpu.dot_dimension_numbers<[1], [0], [0], [1], [0, 0, 1, 1], [], []>} : vector<32x128xf32>, vector<128x128xf32>, vector<32x128xf32> -> vector<32x128xf32>
    %cst_25 = arith.constant 0.000000e+00 : f32
    %29 = vector.broadcast %cst_25 : f32 to vector<32x128xf32>
    %30 = arith.maximumf %28, %29 : vector<32x128xf32>
    %c1_26 = arith.constant 1 : index
    %c0_27 = arith.constant 0 : index
    %c0_28 = arith.constant 0 : index
    %31 = vector.load %arg4[%c1_26, %c0_27, %c0_28] : memref<2x128x128xf32, #tpu.memory_space<vmem>>, vector<1x128x128xf32>
    %32 = vector.shape_cast %31 : vector<1x128x128xf32> to vector<128x128xf32>
    %cst_29 = arith.constant dense<0.000000e+00> : vector<32x128xf32>
    %33 = tpu.matmul %30, %32, %cst_29 {dimension_numbers = #tpu.dot_dimension_numbers<[1], [0], [0], [1], [0, 0, 1, 1], [], []>} : vector<32x128xf32>, vector<128x128xf32>, vector<32x128xf32> -> vector<32x128xf32>
    %34 = vector.shape_cast %33 : vector<32x128xf32> to vector<2x16x128xf32>
    %35 = arith.addf %4, %34 : vector<2x16x128xf32>
    %36 = math.tanh %35 : vector<2x16x128xf32>
    %c2_i32 = arith.constant 2 : i32
    %c0_30 = arith.constant 0 : index
    %c0_31 = arith.constant 0 : index
    %c0_32 = arith.constant 0 : index
    %37 = vector.load %arg2[%c0_30, %c0_31, %c0_32] : memref<2x16x16xbf16, #tpu.memory_space<vmem>>, vector<2x16x16xbf16>
    %38 = arith.extf %37 : vector<2x16x16xbf16> to vector<2x16x16xf32>
    "tpu.trace_start"() <{level = 10 : i32, message = "bnm,bme->bne"}> : () -> ()
    %cst_33 = arith.constant dense<0.000000e+00> : vector<2x16x128xf32>
    %39 = tpu.matmul %38, %36, %cst_33 {dimension_numbers = #tpu.dot_dimension_numbers<[2], [1], [1], [2], [0, 0, 0, 1, 1, 2], [0], [0]>} : vector<2x16x16xf32>, vector<2x16x128xf32>, vector<2x16x128xf32> -> vector<2x16x128xf32>
    "tpu.trace_stop"() : () -> ()
    %40 = vector.shape_cast %39 : vector<2x16x128xf32> to vector<32x128xf32>
    %c0_34 = arith.constant 0 : index
    %c0_35 = arith.constant 0 : index
    %c0_36 = arith.constant 0 : index
    %41 = vector.load %arg4[%c0_34, %c0_35, %c0_36] : memref<2x128x128xf32, #tpu.memory_space<vmem>>, vector<1x128x128xf32>
    %42 = vector.shape_cast %41 : vector<1x128x128xf32> to vector<128x128xf32>
    %cst_37 = arith.constant dense<0.000000e+00> : vector<32x128xf32>
    %43 = tpu.matmul %40, %42, %cst_37 {dimension_numbers = #tpu.dot_dimension_numbers<[1], [0], [0], [1], [0, 0, 1, 1], [], []>} : vector<32x128xf32>, vector<128x128xf32>, vector<32x128xf32> -> vector<32x128xf32>
    %cst_38 = arith.constant 0.000000e+00 : f32
    %44 = vector.broadcast %cst_38 : f32 to vector<32x128xf32>
    %45 = arith.maximumf %43, %44 : vector<32x128xf32>
    %c1_39 = arith.constant 1 : index
    %c0_40 = arith.constant 0 : index
    %c0_41 = arith.constant 0 : index
    %46 = vector.load %arg4[%c1_39, %c0_40, %c0_41] : memref<2x128x128xf32, #tpu.memory_space<vmem>>, vector<1x128x128xf32>
    %47 = vector.shape_cast %46 : vector<1x128x128xf32> to vector<128x128xf32>
    %cst_42 = arith.constant dense<0.000000e+00> : vector<32x128xf32>
    %48 = tpu.matmul %45, %47, %cst_42 {dimension_numbers = #tpu.dot_dimension_numbers<[1], [0], [0], [1], [0, 0, 1, 1], [], []>} : vector<32x128xf32>, vector<128x128xf32>, vector<32x128xf32> -> vector<32x128xf32>
    %49 = vector.shape_cast %48 : vector<32x128xf32> to vector<2x16x128xf32>
    %50 = arith.addf %4, %49 : vector<2x16x128xf32>
    %51 = math.tanh %50 : vector<2x16x128xf32>
    %cst_43 = arith.constant dense<0.000000e+00> : vector<2x128xf32>
    %52 = vector.multi_reduction <add>, %51, %cst_43 [1] : vector<2x16x128xf32> to vector<2x128xf32>
    %c0_44 = arith.constant 0 : index
    %c0_45 = arith.constant 0 : index
    %53 = vector.load %arg5[%c0_44, %c0_45] : memref<128x128xf32, #tpu.memory_space<vmem>>, vector<128x128xf32>
    %cst_46 = arith.constant dense<0.000000e+00> : vector<2x128xf32>
    %54 = tpu.matmul %52, %53, %cst_46 {dimension_numbers = #tpu.dot_dimension_numbers<[1], [0], [0], [1], [0, 0, 1, 1], [], []>} : vector<2x128xf32>, vector<128x128xf32>, vector<2x128xf32> -> vector<2x128xf32>
    %c0_47 = arith.constant 0 : index
    %c0_48 = arith.constant 0 : index
    %55 = vector.load %arg6[%c0_47, %c0_48] : memref<1x128xf32, #tpu.memory_space<vmem>>, vector<1x128xf32>
    %56 = vector.broadcast %55 : vector<1x128xf32> to vector<2x128xf32>
    %57 = arith.addf %54, %56 : vector<2x128xf32>
    %c0_49 = arith.constant 0 : index
    %c0_50 = arith.constant 0 : index
    %58 = vector.load %arg7[%c0_49, %c0_50] : memref<2x128xf32, #tpu.memory_space<vmem>>, vector<2x128xf32>
    tpu.vector_store %arg7[%c0_49, %c0_50], %57 {strides = array<i32>} : memref<2x128xf32, #tpu.memory_space<vmem>>, vector<2x128xf32>,
    return
  }
  func.func @transform_0(%arg0: i32) -> (i32, i32, i32) {
    %c0_i32 = arith.constant 0 : i32
    %c0_i32_0 = arith.constant 0 : i32
    %c0_i32_1 = arith.constant 0 : i32
    return %arg0, %c0_i32, %c0_i32_0 : i32, i32, i32
  }
  func.func @transform_1(%arg0: i32) -> (i32, i32, i32) {
    %c0_i32 = arith.constant 0 : i32
    %c0_i32_0 = arith.constant 0 : i32
    %c0_i32_1 = arith.constant 0 : i32
    return %arg0, %c0_i32, %c0_i32_0 : i32, i32, i32
  }
  func.func @transform_2(%arg0: i32) -> (i32, i32) {
    %c0_i32 = arith.constant 0 : i32
    %c0_i32_0 = arith.constant 0 : i32
    %c0_i32_1 = arith.constant 0 : i32
    return %c0_i32, %c0_i32_0 : i32, i32
  }
  func.func @transform_3(%arg0: i32) -> (i32, i32, i32) {
    %c0_i32 = arith.constant 0 : i32
    %c0_i32_0 = arith.constant 0 : i32
    %c0_i32_1 = arith.constant 0 : i32
    %c0_i32_2 = arith.constant 0 : i32
    return %c0_i32, %c0_i32_0, %c0_i32_1 : i32, i32, i32
  }
  func.func @transform_4(%arg0: i32) -> (i32, i32) {
    %c0_i32 = arith.constant 0 : i32
    %c0_i32_0 = arith.constant 0 : i32
    %c0_i32_1 = arith.constant 0 : i32
    return %c0_i32, %c0_i32_0 : i32, i32
  }
  func.func @transform_5(%arg0: i32) -> (i32, i32) {
    %c0_i32 = arith.constant 0 : i32
    %c0_i32_0 = arith.constant 0 : i32
    %c0_i32_1 = arith.constant 0 : i32
    return %c0_i32, %c0_i32_0 : i32, i32
  }
  func.func @transform_6(%arg0: i32) -> (i32, i32) {
    %c0_i32 = arith.constant 0 : i32
    %c0_i32_0 = arith.constant 0 : i32
    return %arg0, %c0_i32 : i32, i32
  }
}

module attributes {stable_mosaic.version = 11 : i64} {
  func.func @fcg_gnn_kernel(%arg0: i32, %arg1: memref<2x16x8xf32, #tpu.memory_space<vmem>>, %arg2: memref<2x16x16xbf16, #tpu.memory_space<vmem>>, %arg3: memref<8x128xf32, #tpu.memory_space<vmem>>, %arg4: memref<2x128x128xf32, #tpu.memory_space<vmem>>, %arg5: memref<128x128xf32, #tpu.memory_space<vmem>>, %arg6: memref<1x128xf32, #tpu.memory_space<vmem>>, %arg7: memref<2x128xf32, #tpu.memory_space<vmem>>) attributes {dimension_semantics = [#tpu.dimension_semantics<parallel>], iteration_bounds = array<i64: 1>, scalar_prefetch = 0 : i64, scratch_operands = 0 : i64, tpu.core_type = #tpu.core_type<tc>, window_params = [{transform_indices = @transform_0, window_bounds = array<i64: 2, 16, 8>}, {transform_indices = @transform_1, window_bounds = array<i64: 2, 16, 16>}, {pipeline_mode = #tpu.pipeline_mode<synchronous>, transform_indices = @transform_2, window_bounds = array<i64: 8, 128>}, {pipeline_mode = #tpu.pipeline_mode<synchronous>, transform_indices = @transform_3, window_bounds = array<i64: 2, 128, 128>}, {pipeline_mode = #tpu.pipeline_mode<synchronous>, transform_indices = @transform_4, window_bounds = array<i64: 128, 128>}, {pipeline_mode = #tpu.pipeline_mode<synchronous>, transform_indices = @transform_5, window_bounds = array<i64: 1, 128>}, {transform_indices = @transform_6, window_bounds = array<i64: 2, 128>}]} {
    %c0 = arith.constant 0 : index
    %c0_0 = arith.constant 0 : index
    %c0_1 = arith.constant 0 : index
    %0 = vector.load %arg1[%c0, %c0_0, %c0_1] : memref<2x16x8xf32, #tpu.memory_space<vmem>>, vector<2x16x8xf32>
    %1 = vector.shape_cast %0 : vector<2x16x8xf32> to vector<32x8xf32>
    %c0_2 = arith.constant 0 : index
    %c0_3 = arith.constant 0 : index
    %2 = vector.load %arg3[%c0_2, %c0_3] : memref<8x128xf32, #tpu.memory_space<vmem>>, vector<8x128xf32>
    %cst = arith.constant dense<0.000000e+00> : vector<32x128xf32>
    %3 = tpu.matmul %1, %2, %cst {dimension_numbers = #tpu.dot_dimension_numbers<[1], [0], [0], [1], [0, 0, 1, 1], [], []>} : vector<32x8xf32>, vector<8x128xf32>, vector<32x128xf32> -> vector<32x128xf32>
    %4 = vector.shape_cast %3 : vector<32x128xf32> to vector<2x16x128xf32>
    %cst_4 = arith.constant 0.000000e+00 : f32
    %5 = vector.broadcast %cst_4 : f32 to vector<2x16x128xf32>
    %6 = arith.maximumf %4, %5 : vector<2x16x128xf32>
    %c0_i32 = arith.constant 0 : i32
    %c0_5 = arith.constant 0 : index
    %c0_6 = arith.constant 0 : index
    %c0_7 = arith.constant 0 : index
    %7 = vector.load %arg2[%c0_5, %c0_6, %c0_7] : memref<2x16x16xbf16, #tpu.memory_space<vmem>>, vector<2x16x16xbf16>
    %8 = arith.extf %7 : vector<2x16x16xbf16> to vector<2x16x16xf32>
    "tpu.trace_start"() <{level = 10 : i32, message = "bnm,bme->bne"}> : () -> ()
    %cst_8 = arith.constant dense<0.000000e+00> : vector<2x16x128xf32>
    %9 = tpu.matmul %8, %6, %cst_8 {dimension_numbers = #tpu.dot_dimension_numbers<[2], [1], [1], [2], [0, 0, 0, 1, 1, 2], [0], [0]>} : vector<2x16x16xf32>, vector<2x16x128xf32>, vector<2x16x128xf32> -> vector<2x16x128xf32>
    "tpu.trace_stop"() : () -> ()
    %10 = vector.shape_cast %9 : vector<2x16x128xf32> to vector<32x128xf32>
    %c0_9 = arith.constant 0 : index
    %c0_10 = arith.constant 0 : index
    %c0_11 = arith.constant 0 : index
    %11 = vector.load %arg4[%c0_9, %c0_10, %c0_11] : memref<2x128x128xf32, #tpu.memory_space<vmem>>, vector<1x128x128xf32>
    %12 = vector.shape_cast %11 : vector<1x128x128xf32> to vector<128x128xf32>
    %cst_12 = arith.constant dense<0.000000e+00> : vector<32x128xf32>
    %13 = tpu.matmul %10, %12, %cst_12 {dimension_numbers = #tpu.dot_dimension_numbers<[1], [0], [0], [1], [0, 0, 1, 1], [], []>} : vector<32x128xf32>, vector<128x128xf32>, vector<32x128xf32> -> vector<32x128xf32>
    %cst_13 = arith.constant 0.000000e+00 : f32
    %14 = vector.broadcast %cst_13 : f32 to vector<32x128xf32>
    %15 = arith.maximumf %13, %14 : vector<32x128xf32>
    %c1 = arith.constant 1 : index
    %c0_14 = arith.constant 0 : index
    %c0_15 = arith.constant 0 : index
    %16 = vector.load %arg4[%c1, %c0_14, %c0_15] : memref<2x128x128xf32, #tpu.memory_space<vmem>>, vector<1x128x128xf32>
    %17 = vector.shape_cast %16 : vector<1x128x128xf32> to vector<128x128xf32>
    %cst_16 = arith.constant dense<0.000000e+00> : vector<32x128xf32>
    %18 = tpu.matmul %15, %17, %cst_16 {dimension_numbers = #tpu.dot_dimension_numbers<[1], [0], [0], [1], [0, 0, 1, 1], [], []>} : vector<32x128xf32>, vector<128x128xf32>, vector<32x128xf32> -> vector<32x128xf32>
    %19 = vector.shape_cast %18 : vector<32x128xf32> to vector<2x16x128xf32>
    %20 = arith.addf %4, %19 : vector<2x16x128xf32>
    %21 = math.tanh %20 : vector<2x16x128xf32>
    %c1_i32 = arith.constant 1 : i32
    %c0_17 = arith.constant 0 : index
    %c0_18 = arith.constant 0 : index
    %c0_19 = arith.constant 0 : index
    %22 = vector.load %arg2[%c0_17, %c0_18, %c0_19] : memref<2x16x16xbf16, #tpu.memory_space<vmem>>, vector<2x16x16xbf16>
    %23 = arith.extf %22 : vector<2x16x16xbf16> to vector<2x16x16xf32>
    "tpu.trace_start"() <{level = 10 : i32, message = "bnm,bme->bne"}> : () -> ()
    %cst_20 = arith.constant dense<0.000000e+00> : vector<2x16x128xf32>
    %24 = tpu.matmul %23, %21, %cst_20 {dimension_numbers = #tpu.dot_dimension_numbers<[2], [1], [1], [2], [0, 0, 0, 1, 1, 2], [0], [0]>} : vector<2x16x16xf32>, vector<2x16x128xf32>, vector<2x16x128xf32> -> vector<2x16x128xf32>
    "tpu.trace_stop"() : () -> ()
    %25 = vector.shape_cast %24 : vector<2x16x128xf32> to vector<32x128xf32>
    %c0_21 = arith.constant 0 : index
    %c0_22 = arith.constant 0 : index
    %c0_23 = arith.constant 0 : index
    %26 = vector.load %arg4[%c0_21, %c0_22, %c0_23] : memref<2x128x128xf32, #tpu.memory_space<vmem>>, vector<1x128x128xf32>
    %27 = vector.shape_cast %26 : vector<1x128x128xf32> to vector<128x128xf32>
    %cst_24 = arith.constant dense<0.000000e+00> : vector<32x128xf32>
    %28 = tpu.matmul %25, %27, %cst_24 {dimension_numbers = #tpu.dot_dimension_numbers<[1], [0], [0], [1], [0, 0, 1, 1], [], []>} : vector<32x128xf32>, vector<128x128xf32>, vector<32x128xf32> -> vector<32x128xf32>
    %cst_25 = arith.constant 0.000000e+00 : f32
    %29 = vector.broadcast %cst_25 : f32 to vector<32x128xf32>
    %30 = arith.maximumf %28, %29 : vector<32x128xf32>
    %c1_26 = arith.constant 1 : index
    %c0_27 = arith.constant 0 : index
    %c0_28 = arith.constant 0 : index
    %31 = vector.load %arg4[%c1_26, %c0_27, %c0_28] : memref<2x128x128xf32, #tpu.memory_space<vmem>>, vector<1x128x128xf32>
    %32 = vector.shape_cast %31 : vector<1x128x128xf32> to vector<128x128xf32>
    %cst_29 = arith.constant dense<0.000000e+00> : vector<32x128xf32>
    %33 = tpu.matmul %30, %32, %cst_29 {dimension_numbers = #tpu.dot_dimension_numbers<[1], [0], [0], [1], [0, 0, 1, 1], [], []>} : vector<32x128xf32>, vector<128x128xf32>, vector<32x128xf32> -> vector<32x128xf32>
    %34 = vector.shape_cast %33 : vector<32x128xf32> to vector<2x16x128xf32>
    %35 = arith.addf %4, %34 : vector<2x16x128xf32>
    %36 = math.tanh %35 : vector<2x16x128xf32>
    %c2_i32 = arith.constant 2 : i32
    %c0_30 = arith.constant 0 : index
    %c0_31 = arith.constant 0 : index
    %c0_32 = arith.constant 0 : index
    %37 = vector.load %arg2[%c0_30, %c0_31, %c0_32] : memref<2x16x16xbf16, #tpu.memory_space<vmem>>, vector<2x16x16xbf16>
    %38 = arith.extf %37 : vector<2x16x16xbf16> to vector<2x16x16xf32>
    "tpu.trace_start"() <{level = 10 : i32, message = "bnm,bme->bne"}> : () -> ()
    %cst_33 = arith.constant dense<0.000000e+00> : vector<2x16x128xf32>
    %39 = tpu.matmul %38, %36, %cst_33 {dimension_numbers = #tpu.dot_dimension_numbers<[2], [1], [1], [2], [0, 0, 0, 1, 1, 2], [0], [0]>} : vector<2x16x16xf32>, vector<2x16x128xf32>, vector<2x16x128xf32> -> vector<2x16x128xf32>
    "tpu.trace_stop"() : () -> ()
    %40 = vector.shape_cast %39 : vector<2x16x128xf32> to vector<32x128xf32>
    %c0_34 = arith.constant 0 : index
    %c0_35 = arith.constant 0 : index
    %c0_36 = arith.constant 0 : index
    %41 = vector.load %arg4[%c0_34, %c0_35, %c0_36] : memref<2x128x128xf32, #tpu.memory_space<vmem>>, vector<1x128x128xf32>
    %42 = vector.shape_cast %41 : vector<1x128x128xf32> to vector<128x128xf32>
    %cst_37 = arith.constant dense<0.000000e+00> : vector<32x128xf32>
    %43 = tpu.matmul %40, %42, %cst_37 {dimension_numbers = #tpu.dot_dimension_numbers<[1], [0], [0], [1], [0, 0, 1, 1], [], []>} : vector<32x128xf32>, vector<128x128xf32>, vector<32x128xf32> -> vector<32x128xf32>
    %cst_38 = arith.constant 0.000000e+00 : f32
    %44 = vector.broadcast %cst_38 : f32 to vector<32x128xf32>
    %45 = arith.maximumf %43, %44 : vector<32x128xf32>
    %c1_39 = arith.constant 1 : index
    %c0_40 = arith.constant 0 : index
    %c0_41 = arith.constant 0 : index
    %46 = vector.load %arg4[%c1_39, %c0_40, %c0_41] : memref<2x128x128xf32, #tpu.memory_space<vmem>>, vector<1x128x128xf32>
    %47 = vector.shape_cast %46 : vector<1x128x128xf32> to vector<128x128xf32>
    %cst_42 = arith.constant dense<0.000000e+00> : vector<32x128xf32>
    %48 = tpu.matmul %45, %47, %cst_42 {dimension_numbers = #tpu.dot_dimension_numbers<[1], [0], [0], [1], [0, 0, 1, 1], [], []>} : vector<32x128xf32>, vector<128x128xf32>, vector<32x128xf32> -> vector<32x128xf32>
    %49 = vector.shape_cast %48 : vector<32x128xf32> to vector<2x16x128xf32>
    %50 = arith.addf %4, %49 : vector<2x16x128xf32>
    %51 = math.tanh %50 : vector<2x16x128xf32>
    %cst_43 = arith.constant dense<0.000000e+00> : vector<2x128xf32>
    %52 = vector.multi_reduction <add>, %51, %cst_43 [1] : vector<2x16x128xf32> to vector<2x128xf32>
    %c0_44 = arith.constant 0 : index
    %c0_45 = arith.constant 0 : index
    %53 = vector.load %arg5[%c0_44, %c0_45] : memref<128x128xf32, #tpu.memory_space<vmem>>, vector<128x128xf32>
    %cst_46 = arith.constant dense<0.000000e+00> : vector<2x128xf32>
    %54 = tpu.matmul %52, %53, %cst_46 {dimension_numbers = #tpu.dot_dimension_numbers<[1], [0], [0], [1], [0, 0, 1, 1], [], []>} : vector<2x128xf32>, vector<128x128xf32>, vector<2x128xf32> -> vector<2x128xf32>
    %c0_47 = arith.constant 0 : index
    %c0_48 = arith.constant 0 : index
    %55 = vector.load %arg6[%c0_47, %c0_48] : memref<1x128xf32, #tpu.memory_space<vmem>>, vector<1x128xf32>
    %56 = vector.broadcast %55 : vector<1x128xf32> to vector<2x128xf32>
    %57 = arith.addf %54, %56 : vector<2x128xf32>
    %c0_49 = arith.constant 0 : index
    %c0_50 = arith.constant 0 : index
    %58 = vector.load %arg7[%c0_49, %c0_50] : memref<2x128xf32, #tpu.memory_space<vmem>>, vector<2x128xf32>
    tpu.vector_store %arg7[%c0_49, %c0_50], %57 {strides = array<i32>} : memref<2x128xf32, #tpu.memory_space<vmem>>, vector<2x128xf32>,
    return
  }
  func.func @transform_0(%arg0: i32) -> (i32, i32, i32) {
    %c0_i32 = arith.constant 0 : i32
    %c0_i32_0 = arith.constant 0 : i32
    %c0_i32_1 = arith.constant 0 : i32
    return %arg0, %c0_i32, %c0_i32_0 : i32, i32, i32
  }
  func.func @transform_1(%arg0: i32) -> (i32, i32, i32) {
    %c0_i32 = arith.constant 0 : i32
    %c0_i32_0 = arith.constant 0 : i32
    %c0_i32_1 = arith.constant 0 : i32
    return %arg0, %c0_i32, %c0_i32_0 : i32, i32, i32
  }
  func.func @transform_2(%arg0: i32) -> (i32, i32) {
    %c0_i32 = arith.constant 0 : i32
    %c0_i32_0 = arith.constant 0 : i32
    %c0_i32_1 = arith.constant 0 : i32
    return %c0_i32, %c0_i32_0 : i32, i32
  }
  func.func @transform_3(%arg0: i32) -> (i32, i32, i32) {
    %c0_i32 = arith.constant 0 : i32
    %c0_i32_0 = arith.constant 0 : i32
    %c0_i32_1 = arith.constant 0 : i32
    %c0_i32_2 = arith.constant 0 : i32
    return %c0_i32, %c0_i32_0, %c0_i32_1 : i32, i32, i32
  }
  func.func @transform_4(%arg0: i32) -> (i32, i32) {
    %c0_i32 = arith.constant 0 : i32
    %c0_i32_0 = arith.constant 0 : i32
    %c0_i32_1 = arith.constant 0 : i32
    return %c0_i32, %c0_i32_0 : i32, i32
  }
  func.func @transform_5(%arg0: i32) -> (i32, i32) {
    %c0_i32 = arith.constant 0 : i32
    %c0_i32_0 = arith.constant 0 : i32
    %c0_i32_1 = arith.constant 0 : i32
    return %c0_i32, %c0_i32_0 : i32, i32
  }
  func.func @transform_6(%arg0: i32) -> (i32, i32) {
    %c0_i32 = arith.constant 0 : i32
    %c0_i32_0 = arith.constant 0 : i32
    return %arg0, %c0_i32 : i32, i32
  }
}

</mosaic_0001>

<bundles_post_ra>
// kernel: tpu_custom_call.1
= control target key start
LH: loop header
LB: loop body
LE: loop exit
PB: predicated region body
PF: predicated region fallthrough
CT: control target
= control target key end

     0   :  { %11 = vsyncpa [#allocation3], 0  ;;  %s2596_s0 = inlined_call_operand.vmem [shape: f32[2,16,8], index: 0, kind: input, shape index: {}]   ;;  %s2597_s1 = inlined_call_operand.vmem [shape: bf16[2,16,16], index: 1, kind: input, shape index: {}]   ;;  %s2598_s2 = inlined_call_operand.vmem [shape: f32[8,128], index: 2, kind: input, shape index: {}]   ;;  %s2599_s3 = inlined_call_operand.hbm [shape: f32[2,128,128], index: 3, kind: input, shape index: {}]   ;;  %s2600_s4 = inlined_call_operand.hbm [shape: f32[128,128], index: 4, kind: input, shape index: {}]   ;;  %s2601_s5 = inlined_call_operand.vmem [shape: f32[1,128], index: 5, kind: input, shape index: {}]   ;;  %s2602_s6 = inlined_call_operand.hbm [shape: f32[2,128], index: 6, kind: output, shape index: {}]  }
   0x1   :  { %12 = vsyncpa [#allocation6], 0 }
   0x2   :  { %13 = vsyncpa [#allocation4], 0  ;;  %s2309_s21 = smov [#allocation2]   ;;  %s2237_s25 = scalar_lea.hbm %s2599_s3, 4096 }
   0x3   :  { %s25_s22 = sshll.u32 %s2309_s21, 4  ;;  %p2238_p0 = scmp.ne.s32.totalorder %s2599_s3, %s2237_s25  ;;  %s26_s22 = int_to_ptr.vmem [resolvable:$true] %s25_s22 }
   0x4   :  { %p2241_p1 = scmp.lt.u32.totalorder %s2237_s25, %s2599_s3 }
   0x6   :  { %p2243_p2 = pnand %p2241_p1, %p2238_p0 }
   0x8   :  { %2246 = shalt.err (!%p2243_p2)
}
   0x9   :  { %s2247_s30 = scalar_lea.vmem %s26_s22, 4096  ;;  %p2252_p4 = scmp.lt.s32.totalorder %s26_s22, %s26_s22 }
   0xa   :  { %p2248_p3 = scmp.ne.s32.totalorder %s26_s22, %s2247_s30  ;;  %p2253_p5 = scmp.lt.s32.totalorder %s2247_s30, %s2247_s30 }
   0xc   :  { %p2254_p6 = por %p2253_p5, %p2252_p4 }
   0xe   :  { %p2255_p7 = pnand %p2254_p6, %p2248_p3 }
  0x10   :  { %2258 = shalt.err (!%p2255_p7)
}
  0x11   :  { %s2310_s7 = smov 128   ;;  %s2311_s8 = smov 8  }
  0x12   :  { %31 = dma.hbm_to_vmem [thread:$0]  %s2599_s3, 4096, %s26_s22, [#allocation3], %s2310_s7, %s2310_s7, %s2311_s8  }
  0x13   :  { %s2312_s11 = smov [#allocation5]   ;;  %s2259_s15 = scalar_lea.hbm %s2600_s4, 2048 }
  0x14   :  { %s37_s12 = sshll.u32 %s2312_s11, 4  ;;  %p2260_p8 = scmp.ne.s32.totalorder %s2600_s4, %s2259_s15  ;;  %s38_s12 = int_to_ptr.vmem [resolvable:$true] %s37_s12 }
  0x15   :  { %p2263_p9 = scmp.lt.u32.totalorder %s2259_s15, %s2600_s4 }
  0x17   :  { %p2265_p10 = pnand %p2263_p9, %p2260_p8 }
  0x19   :  { %2268 = shalt.err (!%p2265_p10)
}
  0x1a   :  { %s2269_s20 = scalar_lea.vmem %s38_s12, 2048  ;;  %p2274_p12 = scmp.lt.s32.totalorder %s38_s12, %s38_s12 }
  0x1b   :  { %p2270_p11 = scmp.ne.s32.totalorder %s38_s12, %s2269_s20  ;;  %p2275_p13 = scmp.lt.s32.totalorder %s2269_s20, %s2269_s20 }
  0x1d   :  { %p2276_p0 = por %p2275_p13, %p2274_p12 }
  0x1f   :  { %p2277_p1 = pnand %p2276_p0, %p2270_p11 }
  0x21   :  { %2280 = shalt.err (!%p2277_p1)
}
  0x22   :  { %43 = dma.hbm_to_vmem [thread:$0]  %s2600_s4, 2048, %s38_s12, [#allocation6], %s2310_s7, %s2310_s7, %s2311_s8  }
  0x23   :  { %2303 = dma.done.wait [#allocation3], 4096  }
  0x24   :  { %2304 = vsyncadd [#allocation3], 4294963200 }
  0x25   :  { %2305 = dma.done.wait [#allocation6], 2048  }
  0x26   :  { %2306 = vsyncadd [#allocation6], 4294965248  ;;  %vm57_vm0 = vcmask 64512   ;;  %v56_v0 = vld [vmem:[%s2598_s2] sm:$0xff]  ;;  %v53_v2 = vld [vmem:[%s2596_s0 + $0x8] sm:$0xff]  ;;  %vm167_vm1 = vcmask 130048  }
  0x27   :  { %v52_v1 = vld [vmem:[%s2596_s0] sm:$0xff]  ;;  %1652 = vmatprep.subr.mxu0 %v56_v0  ;;  %v54_v3 = vld [vmem:[%s2596_s0 + $0x10] sm:$0xff]  ;;  %v55_v4 = vld [vmem:[%s2596_s0 + $0x18] sm:$0xff]  ;;  %vm2314_vm2 = vmmov 0   ;;  %vm1352_vm3 = vcmask 1041409   ;;  %s2316_s10 = smov [#allocation7]  }
  0x28   :  { %1654 = vmatprep.mubr.msk.f32.mxu0 %vm57_vm0, %v52_v1  ;;  %1653 = vmatpush3.msra.mxu0 %v56_v0  ;;  %v1460_v5 = vld [vmem:[%s2597_s1] sm:$0xff]   ;;  %v331_v8 = vld [vmem:[#allocation2 + $0x8] sm:$0xff]  ;;  %v332_v9 = vld [vmem:[#allocation2 + $0x10] sm:$0xff]  ;;  %s1432_s11 = sshll.u32 %s2316_s10, 4  ;;  %s1433_s11 = int_to_ptr.vmem [resolvable:$true] %s1432_s11 }
  0x29   :  { %1655 = vmatmul.mubr.msk.f32.vlgmr.msra.gmra.mrb[0].mxu0 %vm57_vm0, %v53_v2  ;;  %v2394_v6 = vunpack.c.l.bf16 %v1460_v5  ;;  %v330_v7 = vld [vmem:[#allocation2] sm:$0xff]  ;;  %v333_v11 = vld [vmem:[#allocation2 + $0x18] sm:$0xff]  ;;  %v335_v14 = vld [vmem:[#allocation2 + $0x28] sm:$0xff]  ;;  %v2445_v41 = vunpack.c.h.bf16 %v1460_v5  ;;  %s2281_s12 = scalar_lea.vmem %s1433_s11, 32  ;;  %p2286_p3 = scmp.lt.s32.totalorder %s1433_s11, %s1433_s11 }
  0x2a   :  { %1657 = vmatprep.mubr.msk.f32.mxu0 %vm57_vm0, %v54_v3  ;;  %v2398_v10 = vpack.c.bf16 %v331_v8, %v330_v7  ;;  %v2400_v12 = vpack.c.bf16 %v333_v11, %v332_v9  ;;  %v334_v13 = vld [vmem:[#allocation2 + $0x20] sm:$0xff]  ;;  %v336_v16 = vld [vmem:[#allocation2 + $0x30] sm:$0xff]  ;;  %v337_v17 = vld [vmem:[#allocation2 + $0x38] sm:$0xff]  ;;  %p2282_p2 = scmp.ne.s32.totalorder %s1433_s11, %s2281_s12  ;;  %p2287_p4 = scmp.lt.s32.totalorder %s2281_s12, %s2281_s12 }
  0x2b   :  { %1664 = vmatprep.mubr.msk.f32.mxu1 %vm167_vm1, %v2394_v6  ;;  %v2405_v15 = vpack.c.bf16 %v335_v14, %v334_v13  ;;  %v2409_v18 = vpack.c.bf16 %v337_v17, %v336_v16  ;;  %v338_v19 = vld [vmem:[#allocation2 + $0x40] sm:$0xff]  ;;  %v339_v20 = vld [vmem:[#allocation2 + $0x48] sm:$0xff]  ;;  %v340_v22 = vld [vmem:[#allocation2 + $0x50] sm:$0xff] }
  0x2c   :  { %1974 = vmatprep.subr.bf16.mxu0 %v2398_v10  ;;  %v2413_v21 = vpack.c.bf16 %v339_v20, %v338_v19  ;;  %v341_v23 = vld [vmem:[#allocation2 + $0x58] sm:$0xff]  ;;  %v342_v25 = vld [vmem:[#allocation2 + $0x60] sm:$0xff]  ;;  %v343_v26 = vld [vmem:[#allocation2 + $0x68] sm:$0xff]  ;;  %p2288_p5 = por %p2287_p4, %p2286_p3 }
  0x2d   :  { %1658 = vmatmul.mubr.msk.f32.gmra.mrb[2].mxu0 %vm57_vm0, %v55_v4  ;;  %v2417_v24 = vpack.c.bf16 %v341_v23, %v340_v22  ;;  %v2421_v27 = vpack.c.bf16 %v343_v26, %v342_v25  ;;  %v344_v28 = vld [vmem:[#allocation2 + $0x70] sm:$0xff]  ;;  %v345_v29 = vld [vmem:[#allocation2 + $0x78] sm:$0xff]  ;;  %v1483_v37 = vld [vmem:[%s2597_s1 + $0x8] sm:$0xff]  }
  0x2e   :  { %1976 = vmatpush3.bf16.msra.mxu0 %v2398_v10  ;;  %v2425_v30 = vpack.c.bf16 %v345_v29, %v344_v28  ;;  %v2447_v42 = vunpack.c.l.bf16 %v1483_v37  ;;  %v2451_v44 = vunpack.c.h.bf16 %v1483_v37  ;;  %v436_v45 = vld [vmem:[#allocation2 + $0x80] sm:$0xff]  ;;  %v437_v46 = vld [vmem:[#allocation2 + $0x88] sm:$0xff]  ;;  %v438_v47 = vld [vmem:[#allocation2 + $0x90] sm:$0xff]  ;;  %p2289_p6 = pnand %p2288_p5, %p2282_p2 }
  0x2f   :  { %1978 = vmatprep.subr.bf16.mxu0 %v2400_v12  ;;  %v2457_v48 = vpack.c.bf16 %v437_v46, %v436_v45  ;;  %v439_v49 = vld [vmem:[#allocation2 + $0x98] sm:$0xff]  ;;  %v440_v51 = vld [vmem:[#allocation2 + $0xa0] sm:$0xff]  ;;  %v441_v52 = vld [vmem:[#allocation2 + $0xa8] sm:$0xff] }
  0x30   :  { %v2459_v50 = vpack.c.bf16 %v439_v49, %v438_v47  ;;  %v2465_v53 = vpack.c.bf16 %v441_v52, %v440_v51  ;;  %v442_v54 = vld [vmem:[#allocation2 + $0xb0] sm:$0xff]  ;;  %v443_v55 = vld [vmem:[#allocation2 + $0xb8] sm:$0xff]  ;;  %v444_v57 = vld [vmem:[#allocation2 + $0xc0] sm:$0xff] }
  0x31   :  { %v2469_v56 = vpack.c.bf16 %v443_v55, %v442_v54  ;;  %v445_v58 = vld [vmem:[#allocation2 + $0xc8] sm:$0xff]  ;;  %v446_v60 = vld [vmem:[#allocation2 + $0xd0] sm:$0xff]  ;;  %v447_v61 = vld [vmem:[#allocation2 + $0xd8] sm:$0xff] }
  0x32   :  { %1980 = vmatpush3.bf16.msra.mxu0 %v2400_v12  ;;  %v2473_v59 = vpack.c.bf16 %v445_v58, %v444_v57  ;;  %v2477_v62 = vpack.c.bf16 %v447_v61, %v446_v60  ;;  %v448_v63 = vld [vmem:[#allocation2 + $0xe0] sm:$0xff]  ;;  %v449_v0 = vld [vmem:[#allocation2 + $0xe8] sm:$0xff]  ;;  %v450_v7 = vld [vmem:[#allocation2 + $0xf0] sm:$0xff] }
  0x33   :  { %1982 = vmatprep.subr.bf16.mxu0 %v2405_v15  ;;  %v2481_v1 = vpack.c.bf16 %v449_v0, %v448_v63  ;;  %v451_v8 = vld [vmem:[#allocation2 + $0xf8] sm:$0xff] }
  0x34   :  { %v2499_v9 = vpack.c.bf16 %v451_v8, %v450_v7 }
  0x36   :  { %1984 = vmatpush3.bf16.msra.mxu0 %v2405_v15 }
  0x37   :  { %1986 = vmatprep.subr.bf16.mxu0 %v2409_v18 }
  0x3a   :  { %1988 = vmatpush3.bf16.msra.mxu0 %v2409_v18 }
  0x3b   :  { %1990 = vmatprep.subr.bf16.mxu0 %v2413_v21 }
  0x3e   :  { %1992 = vmatpush3.bf16.msra.mxu0 %v2413_v21 }
  0x3f   :  { %1994 = vmatprep.subr.bf16.mxu0 %v2417_v24 }
  0x42   :  { %1996 = vmatpush3.bf16.msra.mxu0 %v2417_v24 }
  0x43   :  { %1998 = vmatprep.subr.bf16.mxu0 %v2421_v27 }
  0x46   :  { %2000 = vmatpush3.bf16.msra.mxu0 %v2421_v27 }
  0x47   :  { %2002 = vmatprep.subr.bf16.mxu0 %v2425_v30 }
  0x4a   :  { %2004 = vmatpush3.bf16.msra.mxu0 %v2425_v30 }
  0x4b   :  { %2078 = vmatprep.subr.bf16.mxu0 %v2457_v48 }
  0xfc   :  { %v2430_v31 = vpop.f32.mrb[0].mxu0 }
  0xfd   :  { %v2432_v32 = vpop.f32.mrb[1].mxu0  ;;  %v156_v33 = vmax.f32 %v2430_v31, 0.0 }
  0xfe   :  { %v155_v34 = vmax.f32 %v2432_v32, 0.0 }
 0x100   :  { %v2436_v35 = vpop.f32.mrb[2].mxu0  ;;  %v1965_v36 = vpack.c.bf16 %v156_v33, %v155_v34 }
 0x101   :  { %v158_v38 = vmax.f32 %v2436_v35, 0.0  ;;  %v2442_v39 = vpop.f32.mrb[3].mxu0 }
 0x102   :  { %v157_v40 = vmax.f32 %v2442_v39, 0.0  ;;  %1966 = vmatprep.subr.bf16.mxu1 %v1965_v36 }
 0x103   :  { %1968 = vmatpush3.bf16.msra.mxu1 %v1965_v36 }
 0x104   :  { %v1969_v43 = vpack.c.bf16 %v158_v38, %v157_v40 }
 0x106   :  { %1665 = vmatmul.mubr.msk.f32.vlgmr.msra.gmra.mrb[0].mxu1 %vm167_vm1, %v2445_v41  ;;  %1970 = vmatprep.subr.bf16.mxu1 %v1969_v43 }
 0x107   :  { %1972 = vmatpush3.bf16.msra.mxu1 %v1969_v43  ;;  %1671 = vmatprep.mubr.msk.f32.mxu1 %vm167_vm1, %v2447_v42 }
 0x108   :  { %2006 = vmatprep.subr.bf16.mxu1 %v2457_v48 }
 0x10a   :  { %1672 = vmatmul.mubr.msk.f32.vlgmr.msra.gmra.mrb[2].mxu1 %vm167_vm1, %v2451_v44 }
 0x10b   :  { %2008 = vmatpush3.bf16.msra.mxu1 %v2457_v48 }
 0x10c   :  { %2010 = vmatprep.subr.bf16.mxu1 %v2459_v50 }
 0x10f   :  { %2012 = vmatpush3.bf16.msra.mxu1 %v2459_v50 }
 0x110   :  { %2014 = vmatprep.subr.bf16.mxu1 %v2465_v53 }
 0x113   :  { %2016 = vmatpush3.bf16.msra.mxu1 %v2465_v53 }
 0x114   :  { %2018 = vmatprep.subr.bf16.mxu1 %v2469_v56 }
 0x117   :  { %2020 = vmatpush3.bf16.msra.mxu1 %v2469_v56 }
 0x118   :  { %2022 = vmatprep.subr.bf16.mxu1 %v2473_v59 }
 0x11b   :  { %2024 = vmatpush3.bf16.msra.mxu1 %v2473_v59 }
 0x11c   :  { %2026 = vmatprep.subr.bf16.mxu1 %v2477_v62 }
 0x11f   :  { %2028 = vmatpush3.bf16.msra.mxu1 %v2477_v62 }
 0x120   :  { %2030 = vmatprep.subr.bf16.mxu1 %v2481_v1 }
 0x123   :  { %2032 = vmatpush3.bf16.msra.mxu1 %v2481_v1 }
 0x124   :  { %2034 = vmatprep.subr.bf16.mxu1 %v2499_v9 }
 0x127   :  { %2036 = vmatpush3.bf16.msra.mxu1 %v2499_v9 }
 0x1d9   :  { %v1666_v2 = vpop.f32.mrb[0].mxu1 }
 0x1da   :  { %v240_v3 = vpop.f32.mrb[1].mxu1 }
 0x1db   :  { %1706 = vmatprep.mubr.f32.mxu0 %v240_v3 }
 0x1dc   :  { %1707 = vmatmul.mubr.f32.vlgmr.msra.gmra.mrb[4].mxu0 %v1666_v2 }
 0x1dd   :  { %v1673_v4 = vpop.f32.mrb[2].mxu1  ;;  %2080 = vmatpush3.bf16.msra.mxu0 %v2457_v48 }
 0x1de   :  { %v321_v5 = vpop.f32.mrb[3].mxu1  ;;  %2082 = vmatprep.subr.bf16.mxu0 %v2459_v50 }
 0x1df   :  { %1709 = vmatprep.mubr.f32.mxu0 %v321_v5 }
 0x1e0   :  { %1710 = vmatmul.mubr.f32.gmra.mrb[6].mxu0 %v1673_v4 }
 0x1e1   :  { %2084 = vmatpush3.bf16.msra.mxu0 %v2459_v50 }
 0x1e2   :  { %2086 = vmatprep.subr.bf16.mxu0 %v2465_v53 }
 0x1e5   :  { %2088 = vmatpush3.bf16.msra.mxu0 %v2465_v53 }
 0x1e6   :  { %2090 = vmatprep.subr.bf16.mxu0 %v2469_v56 }
 0x1e9   :  { %2092 = vmatpush3.bf16.msra.mxu0 %v2469_v56 }
 0x1ea   :  { %2094 = vmatprep.subr.bf16.mxu0 %v2473_v59 }
 0x1ed   :  { %2096 = vmatpush3.bf16.msra.mxu0 %v2473_v59 }
 0x1ee   :  { %2098 = vmatprep.subr.bf16.mxu0 %v2477_v62 }
 0x1f1   :  { %2100 = vmatpush3.bf16.msra.mxu0 %v2477_v62 }
 0x1f2   :  { %2102 = vmatprep.subr.bf16.mxu0 %v2481_v1 }
 0x1f5   :  { %2104 = vmatpush3.bf16.msra.mxu0 %v2481_v1 }
 0x1f6   :  { %2106 = vmatprep.subr.bf16.mxu0 %v2499_v9 }
 0x1f9   :  { %2108 = vmatpush3.bf16.msra.mxu0 %v2499_v9 }
 0x1fa   :  { %2118 = vmatprep.subr.bf16.mxu0 %v2398_v10 }
 0x2af   :  { %v1708_v11 = vpop.f32.mrb[4].mxu0 }
 0x2b0   :  { %v412_v13 = vpop.f32.mrb[5].mxu0  ;;  %v432_v16 = vmax.f32 %v1708_v11, 0.0 }
 0x2b1   :  { %v431_v14 = vmax.f32 %v412_v13, 0.0  ;;  %v1328_v13 = vld [vmem:[#allocation5 + $0x8] sm:$0xff] }
 0x2b3   :  { %v1711_v17 = vpop.f32.mrb[6].mxu0  ;;  %1744 = vmatprep.mubr.f32.mxu1 %v431_v14 }
 0x2b4   :  { %v422_v19 = vpop.f32.mrb[7].mxu0  ;;  %1745 = vmatmul.mubr.f32.vlgmr.msra.gmra.mrb[4].mxu1 %v432_v16  ;;  %v434_v22 = vmax.f32 %v1711_v17, 0.0  ;;  %v2313_v16 = vmov 0.0|0.0   ;;  %v1329_v17 = vld [vmem:[#allocation5 + $0x10] sm:$0xff] }
 0x2b5   :  { %v433_v20 = vmax.f32 %v422_v19, 0.0  ;;  %v1330_v19 = vld [vmem:[#allocation5 + $0x18] sm:$0xff] }
 0x2b7   :  { %1747 = vmatprep.mubr.f32.mxu1 %v433_v20  ;;  %v2185_v20 = vpack.c.bf16 %v1330_v19, %v1329_v17 }
 0x2b8   :  { %1748 = vmatmul.mubr.f32.gmra.mrb[6].mxu1 %v434_v22  ;;  %v1331_v22 = vld [vmem:[#allocation5 + $0x20] sm:$0xff] }
 0x2b9   :  { %1754 = vmatprep.mubr.msk.f32.mxu1 %vm167_vm1, %v2394_v6 }
 0x387   :  { %v1746_v23 = vpop.f32.mrb[4].mxu1 }
 0x388   :  { %v538_v25 = vadd.f32 %v1746_v23, %v2430_v31  ;;  %v518_v26 = vpop.f32.mrb[5].mxu1  ;;  %v1332_v23 = vld [vmem:[#allocation5 + $0x28] sm:$0xff] }
 0x389   :  { %v537_v28 = vadd.f32 %v518_v26, %v2432_v32  ;;  %v1333_v26 = vld [vmem:[#allocation5 + $0x30] sm:$0xff] }
 0x38a   :  { %2213 = vtanh.f32 %v538_v25  ;;  %v2188_v25 = vpack.c.bf16 %v1332_v23, %v1331_v22 }
 0x38b   :  { %2215 = vtanh.f32 %v537_v28  ;;  %v1749_v29 = vpop.f32.mrb[6].mxu1  ;;  %v1334_v28 = vld [vmem:[#allocation5 + $0x38] sm:$0xff] }
 0x38c   :  { %v540_v33 = vadd.f32 %v1749_v29, %v2436_v35  ;;  %v528_v34 = vpop.f32.mrb[7].mxu1  ;;  %v2191_v29 = vpack.c.bf16 %v1334_v28, %v1333_v26 }
 0x38d   :  { %v539_v36 = vadd.f32 %v528_v34, %v2442_v39  ;;  %v1336_v34 = vld [vmem:[#allocation5 + $0x48] sm:$0xff] }
 0x38e   :  { %2217 = vtanh.f32 %v540_v33  ;;  %v1335_v33 = vld [vmem:[#allocation5 + $0x40] sm:$0xff] }
 0x38f   :  { %2219 = vtanh.f32 %v539_v36  ;;  %v2194_v36 = vpack.c.bf16 %v1336_v34, %v1335_v33 }
 0x394   :  { %v2214_v37 = vpop.eup %2213 }
 0x395   :  { %v2216_v38 = vpop.eup %2215 }
 0x396   :  { %v2037_v40 = vpack.c.bf16 %v2214_v37, %v2216_v38  ;;  %v1337_v37 = vld [vmem:[#allocation5 + $0x50] sm:$0xff]  ;;  %v1338_v38 = vld [vmem:[#allocation5 + $0x58] sm:$0xff] }
 0x398   :  { %v2218_v43 = vpop.eup %2217  ;;  %2038 = vmatprep.subr.bf16.mxu1 %v2037_v40 }
 0x399   :  { %v2220_v45 = vpop.eup %2219  ;;  %2040 = vmatpush3.bf16.msra.mxu1 %v2037_v40  ;;  %v2197_v40 = vpack.c.bf16 %v1338_v38, %v1337_v37 }
 0x39a   :  { %v2041_v46 = vpack.c.bf16 %v2218_v43, %v2220_v45  ;;  %v1339_v43 = vld [vmem:[#allocation5 + $0x60] sm:$0xff]  ;;  %v1340_v45 = vld [vmem:[#allocation5 + $0x68] sm:$0xff] }
 0x39c   :  { %1755 = vmatmul.mubr.msk.f32.vlgmr.msra.gmra.mrb[8].mxu1 %vm167_vm1, %v2445_v41  ;;  %2042 = vmatprep.subr.bf16.mxu1 %v2041_v46 }
 0x39d   :  { %2044 = vmatpush3.bf16.msra.mxu1 %v2041_v46  ;;  %1761 = vmatprep.mubr.msk.f32.mxu1 %vm167_vm1, %v2447_v42  ;;  %v2200_v46 = vpack.c.bf16 %v1340_v45, %v1339_v43 }
 0x39e   :  { %2046 = vmatprep.subr.bf16.mxu1 %v2398_v10 }
 0x3a0   :  { %1762 = vmatmul.mubr.msk.f32.vlgmr.msra.gmra.mrb[10].mxu1 %vm167_vm1, %v2451_v44 }
 0x3a1   :  { %2048 = vmatpush3.bf16.msra.mxu1 %v2398_v10 }
 0x3a2   :  { %2050 = vmatprep.subr.bf16.mxu1 %v2400_v12 }
 0x3a5   :  { %2052 = vmatpush3.bf16.msra.mxu1 %v2400_v12 }
 0x3a6   :  { %2054 = vmatprep.subr.bf16.mxu1 %v2405_v15 }
 0x3a9   :  { %2056 = vmatpush3.bf16.msra.mxu1 %v2405_v15 }
 0x3aa   :  { %2058 = vmatprep.subr.bf16.mxu1 %v2409_v18 }
 0x3ad   :  { %2060 = vmatpush3.bf16.msra.mxu1 %v2409_v18 }
 0x3ae   :  { %2062 = vmatprep.subr.bf16.mxu1 %v2413_v21 }
 0x3b1   :  { %2064 = vmatpush3.bf16.msra.mxu1 %v2413_v21 }
 0x3b2   :  { %2066 = vmatprep.subr.bf16.mxu1 %v2417_v24 }
 0x3b5   :  { %2068 = vmatpush3.bf16.msra.mxu1 %v2417_v24 }
 0x3b6   :  { %2070 = vmatprep.subr.bf16.mxu1 %v2421_v27 }
 0x3b9   :  { %2072 = vmatpush3.bf16.msra.mxu1 %v2421_v27 }
 0x3ba   :  { %2074 = vmatprep.subr.bf16.mxu1 %v2425_v30 }
 0x3bd   :  { %2076 = vmatpush3.bf16.msra.mxu1 %v2425_v30 }
 0x46f   :  { %v1756_v47 = vpop.f32.mrb[8].mxu1 }
 0x470   :  { %v625_v49 = vpop.f32.mrb[9].mxu1 }
 0x471   :  { %1796 = vmatprep.mubr.f32.mxu1 %v625_v49  ;;  %v1342_v49 = vld [vmem:[#allocation5 + $0x78] sm:$0xff] }
 0x472   :  { %1797 = vmatmul.mubr.f32.vlgmr.msra.gmra.mrb[12].mxu1 %v1756_v47  ;;  %v1341_v47 = vld [vmem:[#allocation5 + $0x70] sm:$0xff] }
 0x473   :  { %v1763_v51 = vpop.f32.mrb[10].mxu1 }
 0x474   :  { %v706_v52 = vpop.f32.mrb[11].mxu1 }
 0x475   :  { %1799 = vmatprep.mubr.f32.mxu1 %v706_v52  ;;  %v2203_v52 = vpack.c.bf16 %v1342_v49, %v1341_v47 }
 0x476   :  { %1800 = vmatmul.mubr.f32.gmra.mrb[14].mxu1 %v1763_v51  ;;  %v2315_v51 = vmov 0.0  }
 0x477   :  { %1844 = vmatprep.mubr.msk.f32.mxu1 %vm167_vm1, %v2394_v6 }
 0x545   :  { %v1798_v54 = vpop.f32.mrb[12].mxu1 }
 0x546   :  { %v797_v55 = vpop.f32.mrb[13].mxu1  ;;  %v817_v58 = vmax.f32 %v1798_v54, 0.0 }
 0x547   :  { %v816_v57 = vmax.f32 %v797_v55, 0.0 }
 0x549   :  { %v1801_v60 = vpop.f32.mrb[14].mxu1  ;;  %1834 = vmatprep.mubr.f32.mxu0 %v816_v57 }
 0x54a   :  { %v807_v61 = vpop.f32.mrb[15].mxu1  ;;  %1835 = vmatmul.mubr.f32.vlgmr.msra.gmra.mrb[8].mxu0 %v817_v58  ;;  %v819_v0 = vmax.f32 %v1801_v60, 0.0 }
 0x54b   :  { %v818_v63 = vmax.f32 %v807_v61, 0.0  ;;  %2120 = vmatpush3.bf16.msra.mxu0 %v2398_v10 }
 0x54c   :  { %2122 = vmatprep.subr.bf16.mxu0 %v2400_v12 }
 0x54d   :  { %1837 = vmatprep.mubr.f32.mxu0 %v818_v63 }
 0x54e   :  { %1838 = vmatmul.mubr.f32.gmra.mrb[10].mxu0 %v819_v0 }
 0x54f   :  { %2124 = vmatpush3.bf16.msra.mxu0 %v2400_v12 }
 0x550   :  { %2126 = vmatprep.subr.bf16.mxu0 %v2405_v15 }
 0x553   :  { %2128 = vmatpush3.bf16.msra.mxu0 %v2405_v15 }
 0x554   :  { %2130 = vmatprep.subr.bf16.mxu0 %v2409_v18 }
 0x557   :  { %2132 = vmatpush3.bf16.msra.mxu0 %v2409_v18 }
 0x558   :  { %2134 = vmatprep.subr.bf16.mxu0 %v2413_v21 }
 0x55b   :  { %2136 = vmatpush3.bf16.msra.mxu0 %v2413_v21 }
 0x55c   :  { %2138 = vmatprep.subr.bf16.mxu0 %v2417_v24 }
 0x55f   :  { %2140 = vmatpush3.bf16.msra.mxu0 %v2417_v24 }
 0x560   :  { %2142 = vmatprep.subr.bf16.mxu0 %v2421_v27 }
 0x563   :  { %2144 = vmatpush3.bf16.msra.mxu0 %v2421_v27 }
 0x564   :  { %2146 = vmatprep.subr.bf16.mxu0 %v2425_v30 }
 0x567   :  { %2148 = vmatpush3.bf16.msra.mxu0 %v2425_v30 }
 0x568   :  { %2181 = vmatprep.subr.bf16.mxu0 %v2313_v16 }
 0x61d   :  { %v1836_v6 = vpop.f32.mrb[8].mxu0 }
 0x61e   :  { %v922_v10 = vadd.f32 %v1836_v6, %v2430_v31  ;;  %v902_v12 = vpop.f32.mrb[9].mxu0 }
 0x61f   :  { %v921_v15 = vadd.f32 %v902_v12, %v2432_v32 }
 0x620   :  { %2221 = vtanh.f32 %v922_v10 }
 0x621   :  { %2223 = vtanh.f32 %v921_v15  ;;  %v1839_v18 = vpop.f32.mrb[10].mxu0 }
 0x622   :  { %v924_v21 = vadd.f32 %v1839_v18, %v2436_v35  ;;  %v912_v24 = vpop.f32.mrb[11].mxu0 }
 0x623   :  { %v923_v2 = vadd.f32 %v912_v24, %v2442_v39 }
 0x624   :  { %2225 = vtanh.f32 %v924_v21 }
 0x625   :  { %2227 = vtanh.f32 %v923_v2 }
 0x62a   :  { %v2222_v27 = vpop.eup %2221 }
 0x62b   :  { %v2224_v3 = vpop.eup %2223 }
 0x62c   :  { %v2109_v4 = vpack.c.bf16 %v2222_v27, %v2224_v3 }
 0x62e   :  { %v2226_v30 = vpop.eup %2225  ;;  %2110 = vmatprep.subr.bf16.mxu1 %v2109_v4 }
 0x62f   :  { %v2228_v5 = vpop.eup %2227  ;;  %2112 = vmatpush3.bf16.msra.mxu1 %v2109_v4 }
 0x630   :  { %v2113_v7 = vpack.c.bf16 %v2226_v30, %v2228_v5 }
 0x632   :  { %1845 = vmatmul.mubr.msk.f32.vlgmr.msra.gmra.mrb[16].mxu1 %vm167_vm1, %v2445_v41  ;;  %2114 = vmatprep.subr.bf16.mxu1 %v2113_v7 }
 0x633   :  { %2116 = vmatpush3.bf16.msra.mxu1 %v2113_v7  ;;  %1851 = vmatprep.mubr.msk.f32.mxu1 %vm167_vm1, %v2447_v42 }
 0x634   :  { %2150 = vmatprep.subr.bf16.mxu1 %v2457_v48 }
 0x636   :  { %1852 = vmatmul.mubr.msk.f32.vlgmr.msra.gmra.mrb[18].mxu1 %vm167_vm1, %v2451_v44 }
 0x637   :  { %2152 = vmatpush3.bf16.msra.mxu1 %v2457_v48 }
 0x638   :  { %2154 = vmatprep.subr.bf16.mxu1 %v2459_v50 }
 0x63b   :  { %2156 = vmatpush3.bf16.msra.mxu1 %v2459_v50 }
 0x63c   :  { %2158 = vmatprep.subr.bf16.mxu1 %v2465_v53 }
 0x63f   :  { %2160 = vmatpush3.bf16.msra.mxu1 %v2465_v53 }
 0x640   :  { %2162 = vmatprep.subr.bf16.mxu1 %v2469_v56 }
 0x643   :  { %2164 = vmatpush3.bf16.msra.mxu1 %v2469_v56 }
 0x644   :  { %2166 = vmatprep.subr.bf16.mxu1 %v2473_v59 }
 0x647   :  { %2168 = vmatpush3.bf16.msra.mxu1 %v2473_v59 }
 0x648   :  { %2170 = vmatprep.subr.bf16.mxu1 %v2477_v62 }
 0x64b   :  { %2172 = vmatpush3.bf16.msra.mxu1 %v2477_v62 }
 0x64c   :  { %2174 = vmatprep.subr.bf16.mxu1 %v2481_v1 }
 0x64f   :  { %2176 = vmatpush3.bf16.msra.mxu1 %v2481_v1 }
 0x650   :  { %2178 = vmatprep.subr.bf16.mxu1 %v2499_v9 }
 0x653   :  { %2180 = vmatpush3.bf16.msra.mxu1 %v2499_v9  ;;  %v1327_v9 = vld [vmem:[#allocation5] sm:$0xff] }
 0x654   :  { %v2182_v14 = vpack.c.bf16 %v1328_v13, %v1327_v9 }
 0x705   :  { %v1846_v41 = vpop.f32.mrb[16].mxu1 }
 0x706   :  { %v1009_v42 = vpop.f32.mrb[17].mxu1 }
 0x707   :  { %1886 = vmatprep.mubr.f32.mxu0 %v1009_v42  ;;  %v1458_v42 = vld [vmem:[%s2601_s5] ss:$0 sm:$0xff] }
 0x708   :  { %1887 = vmatmul.mubr.f32.vlgmr.msra.gmra.mrb[12].mxu0 %v1846_v41 }
 0x709   :  { %v1853_v44 = vpop.f32.mrb[18].mxu1  ;;  %2183 = vmatpush3.bf16.msra.mxu0 %v2182_v14 }
 0x70a   :  { %v1090_v48 = vpop.f32.mrb[19].mxu1  ;;  %2184 = vmatprep.subr.bf16.mxu0 %v2313_v16 }
 0x70b   :  { %1889 = vmatprep.mubr.f32.mxu0 %v1090_v48 }
 0x70c   :  { %1890 = vmatmul.mubr.f32.gmra.mrb[14].mxu0 %v1853_v44 }
 0x70d   :  { %2186 = vmatpush3.bf16.msra.mxu0 %v2185_v20  ;;  %1962 = vmatprep.mubr.msk.f32.mxu0 %vm2314_vm2, %v2315_v51 }
 0x70e   :  { %2187 = vmatprep.subr.bf16.mxu0 %v2313_v16 }
 0x711   :  { %2189 = vmatpush3.bf16.msra.mxu0 %v2188_v25 }
 0x712   :  { %2190 = vmatprep.subr.bf16.mxu0 %v2313_v16 }
 0x715   :  { %2192 = vmatpush3.bf16.msra.mxu0 %v2191_v29 }
 0x716   :  { %2193 = vmatprep.subr.bf16.mxu0 %v2313_v16 }
 0x719   :  { %2195 = vmatpush3.bf16.msra.mxu0 %v2194_v36 }
 0x71a   :  { %2196 = vmatprep.subr.bf16.mxu0 %v2313_v16 }
 0x71d   :  { %2198 = vmatpush3.bf16.msra.mxu0 %v2197_v40 }
 0x71e   :  { %2199 = vmatprep.subr.bf16.mxu0 %v2313_v16 }
 0x721   :  { %2201 = vmatpush3.bf16.msra.mxu0 %v2200_v46 }
 0x722   :  { %2202 = vmatprep.subr.bf16.mxu0 %v2313_v16 }
 0x725   :  { %2204 = vmatpush3.bf16.msra.mxu0 %v2203_v52 }
 0x7db   :  { %v1888_v50 = vpop.f32.mrb[12].mxu0 }
 0x7dc   :  { %v1181_v53 = vpop.f32.mrb[13].mxu0  ;;  %v1201_v59 = vmax.f32 %v1888_v50, 0.0 }
 0x7dd   :  { %v1200_v56 = vmax.f32 %v1181_v53, 0.0 }
 0x7df   :  { %v1891_v62 = vpop.f32.mrb[14].mxu0  ;;  %1924 = vmatprep.mubr.f32.mxu1 %v1200_v56 }
 0x7e0   :  { %v1191_v8 = vpop.f32.mrb[15].mxu0  ;;  %1925 = vmatmul.mubr.f32.vlgmr.msra.gmra.mrb[20].mxu1 %v1201_v59  ;;  %v1203_v11 = vmax.f32 %v1891_v62, 0.0 }
 0x7e1   :  { %v1202_v1 = vmax.f32 %v1191_v8, 0.0 }
 0x7e3   :  { %1927 = vmatprep.mubr.f32.mxu1 %v1202_v1 }
 0x7e4   :  { %1928 = vmatmul.mubr.f32.gmra.mrb[22].mxu1 %v1203_v11 }
 0x8b3   :  { %v1926_v54 = vpop.f32.mrb[20].mxu1 }
 0x8b4   :  { %v1306_v55 = vadd.f32 %v1926_v54, %v2430_v31  ;;  %v1286_v57 = vpop.f32.mrb[21].mxu1 }
 0x8b5   :  { %v1305_v58 = vadd.f32 %v1286_v57, %v2432_v32 }
 0x8b6   :  { %2229 = vtanh.f32 %v1306_v55 }
 0x8b7   :  { %2231 = vtanh.f32 %v1305_v58  ;;  %v1929_v60 = vpop.f32.mrb[22].mxu1 }
 0x8b8   :  { %v1308_v61 = vadd.f32 %v1929_v60, %v2436_v35  ;;  %v1296_v63 = vpop.f32.mrb[23].mxu1 }
 0x8b9   :  { %v1307_v0 = vadd.f32 %v1296_v63, %v2442_v39 }
 0x8ba   :  { %2233 = vtanh.f32 %v1308_v61 }
 0x8bb   :  { %2235 = vtanh.f32 %v1307_v0 }
 0x8c0   :  { %v2230_v6 = vpop.eup %2229 }
 0x8c1   :  { %v2232_v10 = vpop.eup %2231 }
 0x8c2   :  { %v1313_v12 = vadd.f32 %v2232_v10, %v2230_v6 }
 0x8c4   :  { %v2234_v15 = vpop.eup %2233  ;;  %v1314_v18 = vrot.slane %v1313_v12, 4 }
 0x8c5   :  { %v2236_v21 = vpop.eup %2235 }
 0x8c6   :  { %v1315_v31 = vadd.f32 %v1314_v18, %v1313_v12  ;;  %v1320_v24 = vadd.f32 %v2236_v21, %v2234_v15 }
 0x8c8   :  { %v1321_v2 = vrot.slane %v1320_v24, 4  ;;  %v1316_v32 = vrot.slane %v1315_v31, 2 }
 0x8ca   :  { %v1322_v27 = vadd.f32 %v1321_v2, %v1320_v24  ;;  %v1317_v3 = vadd.f32 %v1316_v32, %v1315_v31 }
 0x8cc   :  { %v1323_v4 = vrot.slane %v1322_v27, 2  ;;  %v1318_v30 = vrot.slane %v1317_v3, 1 }
 0x8ce   :  { %v1324_v35 = vadd.f32 %v1323_v4, %v1322_v27  ;;  %v1319_v39 = vadd.f32 %v1318_v30, %v1317_v3 }
 0x8d0   :  { %v1325_v5 = vrot.slane %v1324_v35, 1 }
 0x8d2   :  { %v1326_v7 = vadd.f32 %v1325_v5, %v1324_v35 }
 0x8d4   :  { %v1353_v41 = vsel %vm1352_vm3, %v1326_v7, %v1319_v39 }
 0x8d5   :  { %1963 = vmatmul.mubr.f32.vlgmr.msra.gmra.mrb[16].mxu0 %v1353_v41 }
 0x9a8   :  { %v1421_v44 = vpop.f32.mrb[16].mxu0 }
 0x9a9   :  { %v1422_v48 = vadd.f32 %v1458_v42, %v1421_v44  ;;  %v1964_v50 = vpop.f32.mrb[17].mxu0 }
 0x9ab   :  { %1425 = vst [vmem:[#allocation7] sm:$0x3] %v1422_v48 }
 0x9ac   :  { %2292 = shalt.err (!%p2289_p6)
}
 0x9ad   :  { %s2293_s15 = scalar_lea.hbm %s2602_s6, 32 }
 0x9ae   :  { %p2294_p7 = scmp.ne.s32.totalorder %s2602_s6, %s2293_s15  ;;  %p2297_p8 = scmp.lt.u32.totalorder %s2293_s15, %s2602_s6 }
 0x9b0   :  { %p2299_p9 = pnand %p2297_p8, %p2294_p7 }
 0x9b2   :  { %2302 = shalt.err (!%p2299_p9)
}
 0x9b3   :  { %1435 = dma.vmem_to_hbm [thread:$0]  %s1433_s11, 32, %s2602_s6, [#allocation4]  }
 0x9b4   :  { %2307 = dma.done.wait [#allocation4], 32  }
 0x9b5   :  { %2308 = vsyncadd [#allocation4], 4294967264 }
 0x9b6   :  { %1439 = vsyncpa [#allocation3], 1 }
 0x9b7   :  { %1440 = vsyncpa [#allocation6], 1 }
 0x9b8   :  { %1441 = vsyncpa [#allocation4], 1 }

// kernel: tpu_custom_call.1
= control target key start
LH: loop header
LB: loop body
LE: loop exit
PB: predicated region body
PF: predicated region fallthrough
CT: control target
= control target key end

     0   :  { %11 = vsyncpa [#allocation3], 0  ;;  %s2596_s0 = inlined_call_operand.vmem [shape: f32[2,16,8], index: 0, kind: input, shape index: {}]   ;;  %s2597_s1 = inlined_call_operand.vmem [shape: bf16[2,16,16], index: 1, kind: input, shape index: {}]   ;;  %s2598_s2 = inlined_call_operand.vmem [shape: f32[8,128], index: 2, kind: input, shape index: {}]   ;;  %s2599_s3 = inlined_call_operand.hbm [shape: f32[2,128,128], index: 3, kind: input, shape index: {}]   ;;  %s2600_s4 = inlined_call_operand.hbm [shape: f32[128,128], index: 4, kind: input, shape index: {}]   ;;  %s2601_s5 = inlined_call_operand.vmem [shape: f32[1,128], index: 5, kind: input, shape index: {}]   ;;  %s2602_s6 = inlined_call_operand.hbm [shape: f32[2,128], index: 6, kind: output, shape index: {}]  }
   0x1   :  { %12 = vsyncpa [#allocation6], 0 }
   0x2   :  { %13 = vsyncpa [#allocation4], 0  ;;  %s2309_s21 = smov [#allocation2]   ;;  %s2237_s25 = scalar_lea.hbm %s2599_s3, 4096 }
   0x3   :  { %s25_s22 = sshll.u32 %s2309_s21, 4  ;;  %p2238_p0 = scmp.ne.s32.totalorder %s2599_s3, %s2237_s25  ;;  %s26_s22 = int_to_ptr.vmem [resolvable:$true] %s25_s22 }
   0x4   :  { %p2241_p1 = scmp.lt.u32.totalorder %s2237_s25, %s2599_s3 }
   0x6   :  { %p2243_p2 = pnand %p2241_p1, %p2238_p0 }
   0x8   :  { %2246 = shalt.err (!%p2243_p2)
}
   0x9   :  { %s2247_s30 = scalar_lea.vmem %s26_s22, 4096  ;;  %p2252_p4 = scmp.lt.s32.totalorder %s26_s22, %s26_s22 }
   0xa   :  { %p2248_p3 = scmp.ne.s32.totalorder %s26_s22, %s2247_s30  ;;  %p2253_p5 = scmp.lt.s32.totalorder %s2247_s30, %s2247_s30 }
   0xc   :  { %p2254_p6 = por %p2253_p5, %p2252_p4 }
   0xe   :  { %p2255_p7 = pnand %p2254_p6, %p2248_p3 }
  0x10   :  { %2258 = shalt.err (!%p2255_p7)
}
  0x11   :  { %s2310_s7 = smov 128   ;;  %s2311_s8 = smov 8  }
  0x12   :  { %31 = dma.hbm_to_vmem [thread:$0]  %s2599_s3, 4096, %s26_s22, [#allocation3], %s2310_s7, %s2310_s7, %s2311_s8  }
  0x13   :  { %s2312_s11 = smov [#allocation5]   ;;  %s2259_s15 = scalar_lea.hbm %s2600_s4, 2048 }
  0x14   :  { %s37_s12 = sshll.u32 %s2312_s11, 4  ;;  %p2260_p8 = scmp.ne.s32.totalorder %s2600_s4, %s2259_s15  ;;  %s38_s12 = int_to_ptr.vmem [resolvable:$true] %s37_s12 }
  0x15   :  { %p2263_p9 = scmp.lt.u32.totalorder %s2259_s15, %s2600_s4 }
  0x17   :  { %p2265_p10 = pnand %p2263_p9, %p2260_p8 }
  0x19   :  { %2268 = shalt.err (!%p2265_p10)
}
  0x1a   :  { %s2269_s20 = scalar_lea.vmem %s38_s12, 2048  ;;  %p2274_p12 = scmp.lt.s32.totalorder %s38_s12, %s38_s12 }
  0x1b   :  { %p2270_p11 = scmp.ne.s32.totalorder %s38_s12, %s2269_s20  ;;  %p2275_p13 = scmp.lt.s32.totalorder %s2269_s20, %s2269_s20 }
  0x1d   :  { %p2276_p0 = por %p2275_p13, %p2274_p12 }
  0x1f   :  { %p2277_p1 = pnand %p2276_p0, %p2270_p11 }
  0x21   :  { %2280 = shalt.err (!%p2277_p1)
}
  0x22   :  { %43 = dma.hbm_to_vmem [thread:$0]  %s2600_s4, 2048, %s38_s12, [#allocation6], %s2310_s7, %s2310_s7, %s2311_s8  }
  0x23   :  { %2303 = dma.done.wait [#allocation3], 4096  }
  0x24   :  { %2304 = vsyncadd [#allocation3], 4294963200 }
  0x25   :  { %2305 = dma.done.wait [#allocation6], 2048  }
  0x26   :  { %2306 = vsyncadd [#allocation6], 4294965248  ;;  %vm57_vm0 = vcmask 64512   ;;  %v56_v0 = vld [vmem:[%s2598_s2] sm:$0xff]  ;;  %v53_v2 = vld [vmem:[%s2596_s0 + $0x8] sm:$0xff]  ;;  %vm167_vm1 = vcmask 130048  }
  0x27   :  { %v52_v1 = vld [vmem:[%s2596_s0] sm:$0xff]  ;;  %1652 = vmatprep.subr.mxu0 %v56_v0  ;;  %v54_v3 = vld [vmem:[%s2596_s0 + $0x10] sm:$0xff]  ;;  %v55_v4 = vld [vmem:[%s2596_s0 + $0x18] sm:$0xff]  ;;  %vm2314_vm2 = vmmov 0   ;;  %vm1352_vm3 = vcmask 1041409   ;;  %s2316_s10 = smov [#allocation7]  }
  0x28   :  { %1654 = vmatprep.mubr.msk.f32.mxu0 %vm57_vm0, %v52_v1  ;;  %1653 = vmatpush3.msra.mxu0 %v56_v0  ;;  %v1460_v5 = vld [vmem:[%s2597_s1] sm:$0xff]   ;;  %v331_v8 = vld [vmem:[#allocation2 + $0x8] sm:$0xff]  ;;  %v332_v9 = vld [vmem:[#allocation2 + $0x10] sm:$0xff]  ;;  %s1432_s11 = sshll.u32 %s2316_s10, 4  ;;  %s1433_s11 = int_to_ptr.vmem [resolvable:$true] %s1432_s11 }
  0x29   :  { %1655 = vmatmul.mubr.msk.f32.vlgmr.msra.gmra.mrb[0].mxu0 %vm57_vm0, %v53_v2  ;;  %v2394_v6 = vunpack.c.l.bf16 %v1460_v5  ;;  %v330_v7 = vld [vmem:[#allocation2] sm:$0xff]  ;;  %v333_v11 = vld [vmem:[#allocation2 + $0x18] sm:$0xff]  ;;  %v335_v14 = vld [vmem:[#allocation2 + $0x28] sm:$0xff]  ;;  %v2445_v41 = vunpack.c.h.bf16 %v1460_v5  ;;  %s2281_s12 = scalar_lea.vmem %s1433_s11, 32  ;;  %p2286_p3 = scmp.lt.s32.totalorder %s1433_s11, %s1433_s11 }
  0x2a   :  { %1657 = vmatprep.mubr.msk.f32.mxu0 %vm57_vm0, %v54_v3  ;;  %v2398_v10 = vpack.c.bf16 %v331_v8, %v330_v7  ;;  %v2400_v12 = vpack.c.bf16 %v333_v11, %v332_v9  ;;  %v334_v13 = vld [vmem:[#allocation2 + $0x20] sm:$0xff]  ;;  %v336_v16 = vld [vmem:[#allocation2 + $0x30] sm:$0xff]  ;;  %v337_v17 = vld [vmem:[#allocation2 + $0x38] sm:$0xff]  ;;  %p2282_p2 = scmp.ne.s32.totalorder %s1433_s11, %s2281_s12  ;;  %p2287_p4 = scmp.lt.s32.totalorder %s2281_s12, %s2281_s12 }
  0x2b   :  { %1664 = vmatprep.mubr.msk.f32.mxu1 %vm167_vm1, %v2394_v6  ;;  %v2405_v15 = vpack.c.bf16 %v335_v14, %v334_v13  ;;  %v2409_v18 = vpack.c.bf16 %v337_v17, %v336_v16  ;;  %v338_v19 = vld [vmem:[#allocation2 + $0x40] sm:$0xff]  ;;  %v339_v20 = vld [vmem:[#allocation2 + $0x48] sm:$0xff]  ;;  %v340_v22 = vld [vmem:[#allocation2 + $0x50] sm:$0xff] }
  0x2c   :  { %1974 = vmatprep.subr.bf16.mxu0 %v2398_v10  ;;  %v2413_v21 = vpack.c.bf16 %v339_v20, %v338_v19  ;;  %v341_v23 = vld [vmem:[#allocation2 + $0x58] sm:$0xff]  ;;  %v342_v25 = vld [vmem:[#allocation2 + $0x60] sm:$0xff]  ;;  %v343_v26 = vld [vmem:[#allocation2 + $0x68] sm:$0xff]  ;;  %p2288_p5 = por %p2287_p4, %p2286_p3 }
  0x2d   :  { %1658 = vmatmul.mubr.msk.f32.gmra.mrb[2].mxu0 %vm57_vm0, %v55_v4  ;;  %v2417_v24 = vpack.c.bf16 %v341_v23, %v340_v22  ;;  %v2421_v27 = vpack.c.bf16 %v343_v26, %v342_v25  ;;  %v344_v28 = vld [vmem:[#allocation2 + $0x70] sm:$0xff]  ;;  %v345_v29 = vld [vmem:[#allocation2 + $0x78] sm:$0xff]  ;;  %v1483_v37 = vld [vmem:[%s2597_s1 + $0x8] sm:$0xff]  }
  0x2e   :  { %1976 = vmatpush3.bf16.msra.mxu0 %v2398_v10  ;;  %v2425_v30 = vpack.c.bf16 %v345_v29, %v344_v28  ;;  %v2447_v42 = vunpack.c.l.bf16 %v1483_v37  ;;  %v2451_v44 = vunpack.c.h.bf16 %v1483_v37  ;;  %v436_v45 = vld [vmem:[#allocation2 + $0x80] sm:$0xff]  ;;  %v437_v46 = vld [vmem:[#allocation2 + $0x88] sm:$0xff]  ;;  %v438_v47 = vld [vmem:[#allocation2 + $0x90] sm:$0xff]  ;;  %p2289_p6 = pnand %p2288_p5, %p2282_p2 }
  0x2f   :  { %1978 = vmatprep.subr.bf16.mxu0 %v2400_v12  ;;  %v2457_v48 = vpack.c.bf16 %v437_v46, %v436_v45  ;;  %v439_v49 = vld [vmem:[#allocation2 + $0x98] sm:$0xff]  ;;  %v440_v51 = vld [vmem:[#allocation2 + $0xa0] sm:$0xff]  ;;  %v441_v52 = vld [vmem:[#allocation2 + $0xa8] sm:$0xff] }
  0x30   :  { %v2459_v50 = vpack.c.bf16 %v439_v49, %v438_v47  ;;  %v2465_v53 = vpack.c.bf16 %v441_v52, %v440_v51  ;;  %v442_v54 = vld [vmem:[#allocation2 + $0xb0] sm:$0xff]  ;;  %v443_v55 = vld [vmem:[#allocation2 + $0xb8] sm:$0xff]  ;;  %v444_v57 = vld [vmem:[#allocation2 + $0xc0] sm:$0xff] }
  0x31   :  { %v2469_v56 = vpack.c.bf16 %v443_v55, %v442_v54  ;;  %v445_v58 = vld [vmem:[#allocation2 + $0xc8] sm:$0xff]  ;;  %v446_v60 = vld [vmem:[#allocation2 + $0xd0] sm:$0xff]  ;;  %v447_v61 = vld [vmem:[#allocation2 + $0xd8] sm:$0xff] }
  0x32   :  { %1980 = vmatpush3.bf16.msra.mxu0 %v2400_v12  ;;  %v2473_v59 = vpack.c.bf16 %v445_v58, %v444_v57  ;;  %v2477_v62 = vpack.c.bf16 %v447_v61, %v446_v60  ;;  %v448_v63 = vld [vmem:[#allocation2 + $0xe0] sm:$0xff]  ;;  %v449_v0 = vld [vmem:[#allocation2 + $0xe8] sm:$0xff]  ;;  %v450_v7 = vld [vmem:[#allocation2 + $0xf0] sm:$0xff] }
  0x33   :  { %1982 = vmatprep.subr.bf16.mxu0 %v2405_v15  ;;  %v2481_v1 = vpack.c.bf16 %v449_v0, %v448_v63  ;;  %v451_v8 = vld [vmem:[#allocation2 + $0xf8] sm:$0xff] }
  0x34   :  { %v2499_v9 = vpack.c.bf16 %v451_v8, %v450_v7 }
  0x36   :  { %1984 = vmatpush3.bf16.msra.mxu0 %v2405_v15 }
  0x37   :  { %1986 = vmatprep.subr.bf16.mxu0 %v2409_v18 }
  0x3a   :  { %1988 = vmatpush3.bf16.msra.mxu0 %v2409_v18 }
  0x3b   :  { %1990 = vmatprep.subr.bf16.mxu0 %v2413_v21 }
  0x3e   :  { %1992 = vmatpush3.bf16.msra.mxu0 %v2413_v21 }
  0x3f   :  { %1994 = vmatprep.subr.bf16.mxu0 %v2417_v24 }
  0x42   :  { %1996 = vmatpush3.bf16.msra.mxu0 %v2417_v24 }
  0x43   :  { %1998 = vmatprep.subr.bf16.mxu0 %v2421_v27 }
  0x46   :  { %2000 = vmatpush3.bf16.msra.mxu0 %v2421_v27 }
  0x47   :  { %2002 = vmatprep.subr.bf16.mxu0 %v2425_v30 }
  0x4a   :  { %2004 = vmatpush3.bf16.msra.mxu0 %v2425_v30 }
  0x4b   :  { %2078 = vmatprep.subr.bf16.mxu0 %v2457_v48 }
  0xfc   :  { %v2430_v31 = vpop.f32.mrb[0].mxu0 }
  0xfd   :  { %v2432_v32 = vpop.f32.mrb[1].mxu0  ;;  %v156_v33 = vmax.f32 %v2430_v31, 0.0 }
  0xfe   :  { %v155_v34 = vmax.f32 %v2432_v32, 0.0 }
 0x100   :  { %v2436_v35 = vpop.f32.mrb[2].mxu0  ;;  %v1965_v36 = vpack.c.bf16 %v156_v33, %v155_v34 }
 0x101   :  { %v158_v38 = vmax.f32 %v2436_v35, 0.0  ;;  %v2442_v39 = vpop.f32.mrb[3].mxu0 }
 0x102   :  { %v157_v40 = vmax.f32 %v2442_v39, 0.0  ;;  %1966 = vmatprep.subr.bf16.mxu1 %v1965_v36 }
 0x103   :  { %1968 = vmatpush3.bf16.msra.mxu1 %v1965_v36 }
 0x104   :  { %v1969_v43 = vpack.c.bf16 %v158_v38, %v157_v40 }
 0x106   :  { %1665 = vmatmul.mubr.msk.f32.vlgmr.msra.gmra.mrb[0].mxu1 %vm167_vm1, %v2445_v41  ;;  %1970 = vmatprep.subr.bf16.mxu1 %v1969_v43 }
 0x107   :  { %1972 = vmatpush3.bf16.msra.mxu1 %v1969_v43  ;;  %1671 = vmatprep.mubr.msk.f32.mxu1 %vm167_vm1, %v2447_v42 }
 0x108   :  { %2006 = vmatprep.subr.bf16.mxu1 %v2457_v48 }
 0x10a   :  { %1672 = vmatmul.mubr.msk.f32.vlgmr.msra.gmra.mrb[2].mxu1 %vm167_vm1, %v2451_v44 }
 0x10b   :  { %2008 = vmatpush3.bf16.msra.mxu1 %v2457_v48 }
 0x10c   :  { %2010 = vmatprep.subr.bf16.mxu1 %v2459_v50 }
 0x10f   :  { %2012 = vmatpush3.bf16.msra.mxu1 %v2459_v50 }
 0x110   :  { %2014 = vmatprep.subr.bf16.mxu1 %v2465_v53 }
 0x113   :  { %2016 = vmatpush3.bf16.msra.mxu1 %v2465_v53 }
 0x114   :  { %2018 = vmatprep.subr.bf16.mxu1 %v2469_v56 }
 0x117   :  { %2020 = vmatpush3.bf16.msra.mxu1 %v2469_v56 }
 0x118   :  { %2022 = vmatprep.subr.bf16.mxu1 %v2473_v59 }
 0x11b   :  { %2024 = vmatpush3.bf16.msra.mxu1 %v2473_v59 }
 0x11c   :  { %2026 = vmatprep.subr.bf16.mxu1 %v2477_v62 }
 0x11f   :  { %2028 = vmatpush3.bf16.msra.mxu1 %v2477_v62 }
 0x120   :  { %2030 = vmatprep.subr.bf16.mxu1 %v2481_v1 }
 0x123   :  { %2032 = vmatpush3.bf16.msra.mxu1 %v2481_v1 }
 0x124   :  { %2034 = vmatprep.subr.bf16.mxu1 %v2499_v9 }
 0x127   :  { %2036 = vmatpush3.bf16.msra.mxu1 %v2499_v9 }
 0x1d9   :  { %v1666_v2 = vpop.f32.mrb[0].mxu1 }
 0x1da   :  { %v240_v3 = vpop.f32.mrb[1].mxu1 }
 0x1db   :  { %1706 = vmatprep.mubr.f32.mxu0 %v240_v3 }
 0x1dc   :  { %1707 = vmatmul.mubr.f32.vlgmr.msra.gmra.mrb[4].mxu0 %v1666_v2 }
 0x1dd   :  { %v1673_v4 = vpop.f32.mrb[2].mxu1  ;;  %2080 = vmatpush3.bf16.msra.mxu0 %v2457_v48 }
 0x1de   :  { %v321_v5 = vpop.f32.mrb[3].mxu1  ;;  %2082 = vmatprep.subr.bf16.mxu0 %v2459_v50 }
 0x1df   :  { %1709 = vmatprep.mubr.f32.mxu0 %v321_v5 }
 0x1e0   :  { %1710 = vmatmul.mubr.f32.gmra.mrb[6].mxu0 %v1673_v4 }
 0x1e1   :  { %2084 = vmatpush3.bf16.msra.mxu0 %v2459_v50 }
 0x1e2   :  { %2086 = vmatprep.subr.bf16.mxu0 %v2465_v53 }
 0x1e5   :  { %2088 = vmatpush3.bf16.msra.mxu0 %v2465_v53 }
 0x1e6   :  { %2090 = vmatprep.subr.bf16.mxu0 %v2469_v56 }
 0x1e9   :  { %2092 = vmatpush3.bf16.msra.mxu0 %v2469_v56 }
 0x1ea   :  { %2094 = vmatprep.subr.bf16.mxu0 %v2473_v59 }
 0x1ed   :  { %2096 = vmatpush3.bf16.msra.mxu0 %v2473_v59 }
 0x1ee   :  { %2098 = vmatprep.subr.bf16.mxu0 %v2477_v62 }
 0x1f1   :  { %2100 = vmatpush3.bf16.msra.mxu0 %v2477_v62 }
 0x1f2   :  { %2102 = vmatprep.subr.bf16.mxu0 %v2481_v1 }
 0x1f5   :  { %2104 = vmatpush3.bf16.msra.mxu0 %v2481_v1 }
 0x1f6   :  { %2106 = vmatprep.subr.bf16.mxu0 %v2499_v9 }
 0x1f9   :  { %2108 = vmatpush3.bf16.msra.mxu0 %v2499_v9 }
 0x1fa   :  { %2118 = vmatprep.subr.bf16.mxu0 %v2398_v10 }
 0x2af   :  { %v1708_v11 = vpop.f32.mrb[4].mxu0 }
 0x2b0   :  { %v412_v13 = vpop.f32.mrb[5].mxu0  ;;  %v432_v16 = vmax.f32 %v1708_v11, 0.0 }
 0x2b1   :  { %v431_v14 = vmax.f32 %v412_v13, 0.0  ;;  %v1328_v13 = vld [vmem:[#allocation5 + $0x8] sm:$0xff] }
 0x2b3   :  { %v1711_v17 = vpop.f32.mrb[6].mxu0  ;;  %1744 = vmatprep.mubr.f32.mxu1 %v431_v14 }
 0x2b4   :  { %v422_v19 = vpop.f32.mrb[7].mxu0  ;;  %1745 = vmatmul.mubr.f32.vlgmr.msra.gmra.mrb[4].mxu1 %v432_v16  ;;  %v434_v22 = vmax.f32 %v1711_v17, 0.0  ;;  %v2313_v16 = vmov 0.0|0.0   ;;  %v1329_v17 = vld [vmem:[#allocation5 + $0x10] sm:$0xff] }
 0x2b5   :  { %v433_v20 = vmax.f32 %v422_v19, 0.0  ;;  %v1330_v19 = vld [vmem:[#allocation5 + $0x18] sm:$0xff] }
 0x2b7   :  { %1747 = vmatprep.mubr.f32.mxu1 %v433_v20  ;;  %v2185_v20 = vpack.c.bf16 %v1330_v19, %v1329_v17 }
 0x2b8   :  { %1748 = vmatmul.mubr.f32.gmra.mrb[6].mxu1 %v434_v22  ;;  %v1331_v22 = vld [vmem:[#allocation5 + $0x20] sm:$0xff] }
 0x2b9   :  { %1754 = vmatprep.mubr.msk.f32.mxu1 %vm167_vm1, %v2394_v6 }
 0x387   :  { %v1746_v23 = vpop.f32.mrb[4].mxu1 }
 0x388   :  { %v538_v25 = vadd.f32 %v1746_v23, %v2430_v31  ;;  %v518_v26 = vpop.f32.mrb[5].mxu1  ;;  %v1332_v23 = vld [vmem:[#allocation5 + $0x28] sm:$0xff] }
 0x389   :  { %v537_v28 = vadd.f32 %v518_v26, %v2432_v32  ;;  %v1333_v26 = vld [vmem:[#allocation5 + $0x30] sm:$0xff] }
 0x38a   :  { %2213 = vtanh.f32 %v538_v25  ;;  %v2188_v25 = vpack.c.bf16 %v1332_v23, %v1331_v22 }
 0x38b   :  { %2215 = vtanh.f32 %v537_v28  ;;  %v1749_v29 = vpop.f32.mrb[6].mxu1  ;;  %v1334_v28 = vld [vmem:[#allocation5 + $0x38] sm:$0xff] }
 0x38c   :  { %v540_v33 = vadd.f32 %v1749_v29, %v2436_v35  ;;  %v528_v34 = vpop.f32.mrb[7].mxu1  ;;  %v2191_v29 = vpack.c.bf16 %v1334_v28, %v1333_v26 }
 0x38d   :  { %v539_v36 = vadd.f32 %v528_v34, %v2442_v39  ;;  %v1336_v34 = vld [vmem:[#allocation5 + $0x48] sm:$0xff] }
 0x38e   :  { %2217 = vtanh.f32 %v540_v33  ;;  %v1335_v33 = vld [vmem:[#allocation5 + $0x40] sm:$0xff] }
 0x38f   :  { %2219 = vtanh.f32 %v539_v36  ;;  %v2194_v36 = vpack.c.bf16 %v1336_v34, %v1335_v33 }
 0x394   :  { %v2214_v37 = vpop.eup %2213 }
 0x395   :  { %v2216_v38 = vpop.eup %2215 }
 0x396   :  { %v2037_v40 = vpack.c.bf16 %v2214_v37, %v2216_v38  ;;  %v1337_v37 = vld [vmem:[#allocation5 + $0x50] sm:$0xff]  ;;  %v1338_v38 = vld [vmem:[#allocation5 + $0x58] sm:$0xff] }
 0x398   :  { %v2218_v43 = vpop.eup %2217  ;;  %2038 = vmatprep.subr.bf16.mxu1 %v2037_v40 }
 0x399   :  { %v2220_v45 = vpop.eup %2219  ;;  %2040 = vmatpush3.bf16.msra.mxu1 %v2037_v40  ;;  %v2197_v40 = vpack.c.bf16 %v1338_v38, %v1337_v37 }
 0x39a   :  { %v2041_v46 = vpack.c.bf16 %v2218_v43, %v2220_v45  ;;  %v1339_v43 = vld [vmem:[#allocation5 + $0x60] sm:$0xff]  ;;  %v1340_v45 = vld [vmem:[#allocation5 + $0x68] sm:$0xff] }
 0x39c   :  { %1755 = vmatmul.mubr.msk.f32.vlgmr.msra.gmra.mrb[8].mxu1 %vm167_vm1, %v2445_v41  ;;  %2042 = vmatprep.subr.bf16.mxu1 %v2041_v46 }
 0x39d   :  { %2044 = vmatpush3.bf16.msra.mxu1 %v2041_v46  ;;  %1761 = vmatprep.mubr.msk.f32.mxu1 %vm167_vm1, %v2447_v42  ;;  %v2200_v46 = vpack.c.bf16 %v1340_v45, %v1339_v43 }
 0x39e   :  { %2046 = vmatprep.subr.bf16.mxu1 %v2398_v10 }
 0x3a0   :  { %1762 = vmatmul.mubr.msk.f32.vlgmr.msra.gmra.mrb[10].mxu1 %vm167_vm1, %v2451_v44 }
 0x3a1   :  { %2048 = vmatpush3.bf16.msra.mxu1 %v2398_v10 }
 0x3a2   :  { %2050 = vmatprep.subr.bf16.mxu1 %v2400_v12 }
 0x3a5   :  { %2052 = vmatpush3.bf16.msra.mxu1 %v2400_v12 }
 0x3a6   :  { %2054 = vmatprep.subr.bf16.mxu1 %v2405_v15 }
 0x3a9   :  { %2056 = vmatpush3.bf16.msra.mxu1 %v2405_v15 }
 0x3aa   :  { %2058 = vmatprep.subr.bf16.mxu1 %v2409_v18 }
 0x3ad   :  { %2060 = vmatpush3.bf16.msra.mxu1 %v2409_v18 }
 0x3ae   :  { %2062 = vmatprep.subr.bf16.mxu1 %v2413_v21 }
 0x3b1   :  { %2064 = vmatpush3.bf16.msra.mxu1 %v2413_v21 }
 0x3b2   :  { %2066 = vmatprep.subr.bf16.mxu1 %v2417_v24 }
 0x3b5   :  { %2068 = vmatpush3.bf16.msra.mxu1 %v2417_v24 }
 0x3b6   :  { %2070 = vmatprep.subr.bf16.mxu1 %v2421_v27 }
 0x3b9   :  { %2072 = vmatpush3.bf16.msra.mxu1 %v2421_v27 }
 0x3ba   :  { %2074 = vmatprep.subr.bf16.mxu1 %v2425_v30 }
 0x3bd   :  { %2076 = vmatpush3.bf16.msra.mxu1 %v2425_v30 }
 0x46f   :  { %v1756_v47 = vpop.f32.mrb[8].mxu1 }
 0x470   :  { %v625_v49 = vpop.f32.mrb[9].mxu1 }
 0x471   :  { %1796 = vmatprep.mubr.f32.mxu1 %v625_v49  ;;  %v1342_v49 = vld [vmem:[#allocation5 + $0x78] sm:$0xff] }
 0x472   :  { %1797 = vmatmul.mubr.f32.vlgmr.msra.gmra.mrb[12].mxu1 %v1756_v47  ;;  %v1341_v47 = vld [vmem:[#allocation5 + $0x70] sm:$0xff] }
 0x473   :  { %v1763_v51 = vpop.f32.mrb[10].mxu1 }
 0x474   :  { %v706_v52 = vpop.f32.mrb[11].mxu1 }
 0x475   :  { %1799 = vmatprep.mubr.f32.mxu1 %v706_v52  ;;  %v2203_v52 = vpack.c.bf16 %v1342_v49, %v1341_v47 }
 0x476   :  { %1800 = vmatmul.mubr.f32.gmra.mrb[14].mxu1 %v1763_v51  ;;  %v2315_v51 = vmov 0.0  }
 0x477   :  { %1844 = vmatprep.mubr.msk.f32.mxu1 %vm167_vm1, %v2394_v6 }
 0x545   :  { %v1798_v54 = vpop.f32.mrb[12].mxu1 }
 0x546   :  { %v797_v55 = vpop.f32.mrb[13].mxu1  ;;  %v817_v58 = vmax.f32 %v1798_v54, 0.0 }
 0x547   :  { %v816_v57 = vmax.f32 %v797_v55, 0.0 }
 0x549   :  { %v1801_v60 = vpop.f32.mrb[14].mxu1  ;;  %1834 = vmatprep.mubr.f32.mxu0 %v816_v57 }
 0x54a   :  { %v807_v61 = vpop.f32.mrb[15].mxu1  ;;  %1835 = vmatmul.mubr.f32.vlgmr.msra.gmra.mrb[8].mxu0 %v817_v58  ;;  %v819_v0 = vmax.f32 %v1801_v60, 0.0 }
 0x54b   :  { %v818_v63 = vmax.f32 %v807_v61, 0.0  ;;  %2120 = vmatpush3.bf16.msra.mxu0 %v2398_v10 }
 0x54c   :  { %2122 = vmatprep.subr.bf16.mxu0 %v2400_v12 }
 0x54d   :  { %1837 = vmatprep.mubr.f32.mxu0 %v818_v63 }
 0x54e   :  { %1838 = vmatmul.mubr.f32.gmra.mrb[10].mxu0 %v819_v0 }
 0x54f   :  { %2124 = vmatpush3.bf16.msra.mxu0 %v2400_v12 }
 0x550   :  { %2126 = vmatprep.subr.bf16.mxu0 %v2405_v15 }
 0x553   :  { %2128 = vmatpush3.bf16.msra.mxu0 %v2405_v15 }
 0x554   :  { %2130 = vmatprep.subr.bf16.mxu0 %v2409_v18 }
 0x557   :  { %2132 = vmatpush3.bf16.msra.mxu0 %v2409_v18 }
 0x558   :  { %2134 = vmatprep.subr.bf16.mxu0 %v2413_v21 }
 0x55b   :  { %2136 = vmatpush3.bf16.msra.mxu0 %v2413_v21 }
 0x55c   :  { %2138 = vmatprep.subr.bf16.mxu0 %v2417_v24 }
 0x55f   :  { %2140 = vmatpush3.bf16.msra.mxu0 %v2417_v24 }
 0x560   :  { %2142 = vmatprep.subr.bf16.mxu0 %v2421_v27 }
 0x563   :  { %2144 = vmatpush3.bf16.msra.mxu0 %v2421_v27 }
 0x564   :  { %2146 = vmatprep.subr.bf16.mxu0 %v2425_v30 }
 0x567   :  { %2148 = vmatpush3.bf16.msra.mxu0 %v2425_v30 }
 0x568   :  { %2181 = vmatprep.subr.bf16.mxu0 %v2313_v16 }
 0x61d   :  { %v1836_v6 = vpop.f32.mrb[8].mxu0 }
 0x61e   :  { %v922_v10 = vadd.f32 %v1836_v6, %v2430_v31  ;;  %v902_v12 = vpop.f32.mrb[9].mxu0 }
 0x61f   :  { %v921_v15 = vadd.f32 %v902_v12, %v2432_v32 }
 0x620   :  { %2221 = vtanh.f32 %v922_v10 }
 0x621   :  { %2223 = vtanh.f32 %v921_v15  ;;  %v1839_v18 = vpop.f32.mrb[10].mxu0 }
 0x622   :  { %v924_v21 = vadd.f32 %v1839_v18, %v2436_v35  ;;  %v912_v24 = vpop.f32.mrb[11].mxu0 }
 0x623   :  { %v923_v2 = vadd.f32 %v912_v24, %v2442_v39 }
 0x624   :  { %2225 = vtanh.f32 %v924_v21 }
 0x625   :  { %2227 = vtanh.f32 %v923_v2 }
 0x62a   :  { %v2222_v27 = vpop.eup %2221 }
 0x62b   :  { %v2224_v3 = vpop.eup %2223 }
 0x62c   :  { %v2109_v4 = vpack.c.bf16 %v2222_v27, %v2224_v3 }
 0x62e   :  { %v2226_v30 = vpop.eup %2225  ;;  %2110 = vmatprep.subr.bf16.mxu1 %v2109_v4 }
 0x62f   :  { %v2228_v5 = vpop.eup %2227  ;;  %2112 = vmatpush3.bf16.msra.mxu1 %v2109_v4 }
 0x630   :  { %v2113_v7 = vpack.c.bf16 %v2226_v30, %v2228_v5 }
 0x632   :  { %1845 = vmatmul.mubr.msk.f32.vlgmr.msra.gmra.mrb[16].mxu1 %vm167_vm1, %v2445_v41  ;;  %2114 = vmatprep.subr.bf16.mxu1 %v2113_v7 }
 0x633   :  { %2116 = vmatpush3.bf16.msra.mxu1 %v2113_v7  ;;  %1851 = vmatprep.mubr.msk.f32.mxu1 %vm167_vm1, %v2447_v42 }
 0x634   :  { %2150 = vmatprep.subr.bf16.mxu1 %v2457_v48 }
 0x636   :  { %1852 = vmatmul.mubr.msk.f32.vlgmr.msra.gmra.mrb[18].mxu1 %vm167_vm1, %v2451_v44 }
 0x637   :  { %2152 = vmatpush3.bf16.msra.mxu1 %v2457_v48 }
 0x638   :  { %2154 = vmatprep.subr.bf16.mxu1 %v2459_v50 }
 0x63b   :  { %2156 = vmatpush3.bf16.msra.mxu1 %v2459_v50 }
 0x63c   :  { %2158 = vmatprep.subr.bf16.mxu1 %v2465_v53 }
 0x63f   :  { %2160 = vmatpush3.bf16.msra.mxu1 %v2465_v53 }
 0x640   :  { %2162 = vmatprep.subr.bf16.mxu1 %v2469_v56 }
 0x643   :  { %2164 = vmatpush3.bf16.msra.mxu1 %v2469_v56 }
 0x644   :  { %2166 = vmatprep.subr.bf16.mxu1 %v2473_v59 }
 0x647   :  { %2168 = vmatpush3.bf16.msra.mxu1 %v2473_v59 }
 0x648   :  { %2170 = vmatprep.subr.bf16.mxu1 %v2477_v62 }
 0x64b   :  { %2172 = vmatpush3.bf16.msra.mxu1 %v2477_v62 }
 0x64c   :  { %2174 = vmatprep.subr.bf16.mxu1 %v2481_v1 }
 0x64f   :  { %2176 = vmatpush3.bf16.msra.mxu1 %v2481_v1 }
 0x650   :  { %2178 = vmatprep.subr.bf16.mxu1 %v2499_v9 }
 0x653   :  { %2180 = vmatpush3.bf16.msra.mxu1 %v2499_v9  ;;  %v1327_v9 = vld [vmem:[#allocation5] sm:$0xff] }
 0x654   :  { %v2182_v14 = vpack.c.bf16 %v1328_v13, %v1327_v9 }
 0x705   :  { %v1846_v41 = vpop.f32.mrb[16].mxu1 }
 0x706   :  { %v1009_v42 = vpop.f32.mrb[17].mxu1 }
 0x707   :  { %1886 = vmatprep.mubr.f32.mxu0 %v1009_v42  ;;  %v1458_v42 = vld [vmem:[%s2601_s5] ss:$0 sm:$0xff] }
 0x708   :  { %1887 = vmatmul.mubr.f32.vlgmr.msra.gmra.mrb[12].mxu0 %v1846_v41 }
 0x709   :  { %v1853_v44 = vpop.f32.mrb[18].mxu1  ;;  %2183 = vmatpush3.bf16.msra.mxu0 %v2182_v14 }
 0x70a   :  { %v1090_v48 = vpop.f32.mrb[19].mxu1  ;;  %2184 = vmatprep.subr.bf16.mxu0 %v2313_v16 }
 0x70b   :  { %1889 = vmatprep.mubr.f32.mxu0 %v1090_v48 }
 0x70c   :  { %1890 = vmatmul.mubr.f32.gmra.mrb[14].mxu0 %v1853_v44 }
 0x70d   :  { %2186 = vmatpush3.bf16.msra.mxu0 %v2185_v20  ;;  %1962 = vmatprep.mubr.msk.f32.mxu0 %vm2314_vm2, %v2315_v51 }
 0x70e   :  { %2187 = vmatprep.subr.bf16.mxu0 %v2313_v16 }
 0x711   :  { %2189 = vmatpush3.bf16.msra.mxu0 %v2188_v25 }
 0x712   :  { %2190 = vmatprep.subr.bf16.mxu0 %v2313_v16 }
 0x715   :  { %2192 = vmatpush3.bf16.msra.mxu0 %v2191_v29 }
 0x716   :  { %2193 = vmatprep.subr.bf16.mxu0 %v2313_v16 }
 0x719   :  { %2195 = vmatpush3.bf16.msra.mxu0 %v2194_v36 }
 0x71a   :  { %2196 = vmatprep.subr.bf16.mxu0 %v2313_v16 }
 0x71d   :  { %2198 = vmatpush3.bf16.msra.mxu0 %v2197_v40 }
 0x71e   :  { %2199 = vmatprep.subr.bf16.mxu0 %v2313_v16 }
 0x721   :  { %2201 = vmatpush3.bf16.msra.mxu0 %v2200_v46 }
 0x722   :  { %2202 = vmatprep.subr.bf16.mxu0 %v2313_v16 }
 0x725   :  { %2204 = vmatpush3.bf16.msra.mxu0 %v2203_v52 }
 0x7db   :  { %v1888_v50 = vpop.f32.mrb[12].mxu0 }
 0x7dc   :  { %v1181_v53 = vpop.f32.mrb[13].mxu0  ;;  %v1201_v59 = vmax.f32 %v1888_v50, 0.0 }
 0x7dd   :  { %v1200_v56 = vmax.f32 %v1181_v53, 0.0 }
 0x7df   :  { %v1891_v62 = vpop.f32.mrb[14].mxu0  ;;  %1924 = vmatprep.mubr.f32.mxu1 %v1200_v56 }
 0x7e0   :  { %v1191_v8 = vpop.f32.mrb[15].mxu0  ;;  %1925 = vmatmul.mubr.f32.vlgmr.msra.gmra.mrb[20].mxu1 %v1201_v59  ;;  %v1203_v11 = vmax.f32 %v1891_v62, 0.0 }
 0x7e1   :  { %v1202_v1 = vmax.f32 %v1191_v8, 0.0 }
 0x7e3   :  { %1927 = vmatprep.mubr.f32.mxu1 %v1202_v1 }
 0x7e4   :  { %1928 = vmatmul.mubr.f32.gmra.mrb[22].mxu1 %v1203_v11 }
 0x8b3   :  { %v1926_v54 = vpop.f32.mrb[20].mxu1 }
 0x8b4   :  { %v1306_v55 = vadd.f32 %v1926_v54, %v2430_v31  ;;  %v1286_v57 = vpop.f32.mrb[21].mxu1 }
 0x8b5   :  { %v1305_v58 = vadd.f32 %v1286_v57, %v2432_v32 }
 0x8b6   :  { %2229 = vtanh.f32 %v1306_v55 }
 0x8b7   :  { %2231 = vtanh.f32 %v1305_v58  ;;  %v1929_v60 = vpop.f32.mrb[22].mxu1 }
 0x8b8   :  { %v1308_v61 = vadd.f32 %v1929_v60, %v2436_v35  ;;  %v1296_v63 = vpop.f32.mrb[23].mxu1 }
 0x8b9   :  { %v1307_v0 = vadd.f32 %v1296_v63, %v2442_v39 }
 0x8ba   :  { %2233 = vtanh.f32 %v1308_v61 }
 0x8bb   :  { %2235 = vtanh.f32 %v1307_v0 }
 0x8c0   :  { %v2230_v6 = vpop.eup %2229 }
 0x8c1   :  { %v2232_v10 = vpop.eup %2231 }
 0x8c2   :  { %v1313_v12 = vadd.f32 %v2232_v10, %v2230_v6 }
 0x8c4   :  { %v2234_v15 = vpop.eup %2233  ;;  %v1314_v18 = vrot.slane %v1313_v12, 4 }
 0x8c5   :  { %v2236_v21 = vpop.eup %2235 }
 0x8c6   :  { %v1315_v31 = vadd.f32 %v1314_v18, %v1313_v12  ;;  %v1320_v24 = vadd.f32 %v2236_v21, %v2234_v15 }
 0x8c8   :  { %v1321_v2 = vrot.slane %v1320_v24, 4  ;;  %v1316_v32 = vrot.slane %v1315_v31, 2 }
 0x8ca   :  { %v1322_v27 = vadd.f32 %v1321_v2, %v1320_v24  ;;  %v1317_v3 = vadd.f32 %v1316_v32, %v1315_v31 }
 0x8cc   :  { %v1323_v4 = vrot.slane %v1322_v27, 2  ;;  %v1318_v30 = vrot.slane %v1317_v3, 1 }
 0x8ce   :  { %v1324_v35 = vadd.f32 %v1323_v4, %v1322_v27  ;;  %v1319_v39 = vadd.f32 %v1318_v30, %v1317_v3 }
 0x8d0   :  { %v1325_v5 = vrot.slane %v1324_v35, 1 }
 0x8d2   :  { %v1326_v7 = vadd.f32 %v1325_v5, %v1324_v35 }
 0x8d4   :  { %v1353_v41 = vsel %vm1352_vm3, %v1326_v7, %v1319_v39 }
 0x8d5   :  { %1963 = vmatmul.mubr.f32.vlgmr.msra.gmra.mrb[16].mxu0 %v1353_v41 }
 0x9a8   :  { %v1421_v44 = vpop.f32.mrb[16].mxu0 }
 0x9a9   :  { %v1422_v48 = vadd.f32 %v1458_v42, %v1421_v44  ;;  %v1964_v50 = vpop.f32.mrb[17].mxu0 }
 0x9ab   :  { %1425 = vst [vmem:[#allocation7] sm:$0x3] %v1422_v48 }
 0x9ac   :  { %2292 = shalt.err (!%p2289_p6)
}
 0x9ad   :  { %s2293_s15 = scalar_lea.hbm %s2602_s6, 32 }
 0x9ae   :  { %p2294_p7 = scmp.ne.s32.totalorder %s2602_s6, %s2293_s15  ;;  %p2297_p8 = scmp.lt.u32.totalorder %s2293_s15, %s2602_s6 }
 0x9b0   :  { %p2299_p9 = pnand %p2297_p8, %p2294_p7 }
 0x9b2   :  { %2302 = shalt.err (!%p2299_p9)
}
 0x9b3   :  { %1435 = dma.vmem_to_hbm [thread:$0]  %s1433_s11, 32, %s2602_s6, [#allocation4]  }
 0x9b4   :  { %2307 = dma.done.wait [#allocation4], 32  }
 0x9b5   :  { %2308 = vsyncadd [#allocation4], 4294967264 }
 0x9b6   :  { %1439 = vsyncpa [#allocation3], 1 }
 0x9b7   :  { %1440 = vsyncpa [#allocation6], 1 }
 0x9b8   :  { %1441 = vsyncpa [#allocation4], 1 }

</bundles_post_ra>
